<compile_context>
chip_gen: v5e
topology: v5e:2x2
jax: 0.10.0
libtpu: 0.0.40
codegen_flags: <defaults>
</compile_context>

<pallas_src>
import jax
import jax.numpy as jnp
from jax.experimental import pallas as pl
from jax.experimental.pallas import tpu as pltpu


def _deepstream_kernel(x_ref, boxes_ref, scores_ref, classes_ref):
    # x_ref block: (1, TILE_N, K) for the current (n_tile, batch) grid point.
    x = x_ref[0]                                        # (TILE_N, K)
    tile_n, k = x.shape
    xf = x.astype(jnp.float32)

    # Mask the first 5 channels (box + objectness) to -inf instead of slicing
    # at lane offset 5 (unaligned lane slices are not views -> XLU rotates).
    lane = jax.lax.broadcasted_iota(jnp.int32, xf.shape, dimension=1)
    cls = jnp.where(lane >= 5, xf, -jnp.inf)            # class scores or -inf

    # max + first-maximal-index (matches torch.max tie-breaking).  Lanes < 5
    # hold -inf so they can only satisfy cls == max_val if an entire row is
    # -inf; no extra lane >= 5 guard is needed on the candidate mask.
    max_val = jnp.max(cls, axis=-1, keepdims=True)                   # (TILE_N, 1)
    cand = jnp.where(cls == max_val, lane, k)
    classes = (jnp.min(cand, axis=-1, keepdims=True) - 5).astype(jnp.float32)

    # scores = class_max * objectness, in f32 (exact for bf16 inputs too).
    scores = max_val * xf[:, 4:5]                                    # (TILE_N, 1)

    # Fused relayout: pack boxes(4) | scores(1) | classes(1) | pad(2) into an
    # 8-lane buffer, do ONE channel-minor -> channel-major transpose (exactly
    # one 8-sublane granule), then store sublane slices lane-dense.
    packed = jnp.concatenate(
        [xf[:, :4], scores, classes, jnp.zeros((tile_n, 2), jnp.float32)],
        axis=-1)                                        # (TILE_N, 8)
    packed_t = jnp.transpose(packed)                    # (8, TILE_N)

    boxes_ref[0] = packed_t[0:4].astype(boxes_ref.dtype)     # (4, TILE_N)
    scores_ref[0] = packed_t[4:5].astype(scores_ref.dtype)   # (1, TILE_N)
    classes_ref[0] = packed_t[5:6]                            # (1, TILE_N), f32


def _round_up(n, m):
    return ((n + m - 1) // m) * m


_TARGET_TILE_N = 8192   # amortizes the ~0.35 us per-grid-step overhead
_MAX_TILE_N = 16384     # keeps the double-buffered f32 tile well under VMEM
_NUM_TC = 2             # v7x TensorCores per chip; harmless on v5e/v6e


def _choose_tile_n(N, B):
    """Pick an anchor tile: ~TARGET rows, 128-multiple, near-equal tiles, and
    (best effort) a grid size that is a multiple of the TensorCore count."""
    n_pad = _round_up(N, 128)
    num_tiles = max(1, pl.cdiv(n_pad, _TARGET_TILE_N))
    if (num_tiles * B) % _NUM_TC != 0:
        num_tiles += 1
    tile = _round_up(pl.cdiv(N, num_tiles), 128)
    return max(128, min(tile, n_pad, _MAX_TILE_N))


def deepstream_output(x, *, tile_n=None, native_layout=False):
    """JAX/Pallas equivalent of DeepStreamOutput.forward.

    x: tuple/list whose first element is the prediction tensor [B, N, 5 + C]
       (mirrors the PyTorch module's `x = x[0]`).
    Returns (boxes [B,N,4], scores [B,N,1], classes [B,N,1] float32).
    With native_layout=True, returns the kernel-native lane-dense layout
    ((B,4,N), (B,1,N), (B,1,N)) and skips the wrapper transpose/reshapes.
    """
    pred = x[0]
    B, N, K = pred.shape
    assert K > 5, "expected K = 4 (box) + 1 (objectness) + num_classes"

    if tile_n is None:
        tile_n = _choose_tile_n(N, B)
    else:
        tile_n = max(128, (int(tile_n) // 128) * 128)
        tile_n = min(tile_n, _round_up(N, 128))
    num_n_tiles = pl.cdiv(N, tile_n)

    # VMEM budget derived from the tile (input lane-pads K -> 128; outputs
    # sublane-pad to 8 rows), double-buffered, plus pipeline headroom.
    itemsize = jnp.dtype(pred.dtype).itemsize
    k_pad = _round_up(K, 128)
    vmem_bytes = (
        2 * tile_n * k_pad * itemsize          # input tile, double-buffered
        + 2 * 8 * tile_n * itemsize * 2        # boxes + scores output buffers
        + 2 * 8 * tile_n * 4                   # classes output buffers (f32)
        + (4 << 20))                           # scratch / pipeline headroom
    vmem_bytes = int(min(max(vmem_bytes, 16 << 20), 64 << 20))

    out_shapes = (
        jax.ShapeDtypeStruct((B, 4, N), pred.dtype),   # boxes, channel-major
        jax.ShapeDtypeStruct((B, 1, N), pred.dtype),   # scores
        jax.ShapeDtypeStruct((B, 1, N), jnp.float32),  # classes (.float())
    )

    grid_spec = pltpu.PrefetchScalarGridSpec(
        num_scalar_prefetch=0,
        grid=(num_n_tiles, B),
        in_specs=[pl.BlockSpec((1, tile_n, K), lambda n, b: (b, n, 0))],
        out_specs=[
            pl.BlockSpec((1, 4, tile_n), lambda n, b: (b, 0, n)),
            pl.BlockSpec((1, 1, tile_n), lambda n, b: (b, 0, n)),
            pl.BlockSpec((1, 1, tile_n), lambda n, b: (b, 0, n)),
        ],
    )

    boxes_t, scores_t, classes_t = pl.pallas_call(
        _deepstream_kernel,
        out_shape=out_shapes,
        grid_spec=grid_spec,
        compiler_params=pltpu.CompilerParams(
            dimension_semantics=("parallel", "parallel"),
            vmem_limit_bytes=vmem_bytes,
        ),
    )(pred)

    if native_layout:
        return boxes_t, scores_t, classes_t

    # Restore the PyTorch layout: one cheap XLA transpose for boxes (~9% of
    # the kernel's HBM traffic at K=85) and two free reshapes.
    boxes = jnp.transpose(boxes_t, (0, 2, 1))
    scores = jnp.reshape(scores_t, (B, N, 1))
    classes = jnp.reshape(classes_t, (B, N, 1))
    return boxes, scores, classes


if __name__ == "__main__":
    def reference(pred):
        p = pred.astype(jnp.float32)
        ref_boxes = pred[:, :, :4]
        ref_obj = p[:, :, 4:5]
        ref_cls = p[:, :, 5:]
        ref_scores = (jnp.max(ref_cls, axis=2, keepdims=True) * ref_obj).astype(pred.dtype)
        ref_classes = jnp.argmax(ref_cls, axis=2, keepdims=True).astype(jnp.float32)
        return ref_boxes, ref_scores, ref_classes

    key = jax.random.PRNGKey(0)
    k0, k1, k2 = jax.random.split(key, 3)

    NUM_CLASSES = 80
    K = 5 + NUM_CLASSES

    # Case 1: aligned N, explicit small tile -> grid (2, 2); includes a
    # class-score tie to check torch.max first-index tie-breaking.
    B, N = 2, 512
    pred = jax.random.uniform(k0, (B, N, K), dtype=jnp.float32)
    pred = pred.at[0, 0, 5:].set(0.5)

    boxes, scores, classes = deepstream_output((pred,), tile_n=256)
    jax.block_until_ready((boxes, scores, classes))
    rb, rs, rc = reference(pred)
    assert boxes.shape == (B, N, 4) and scores.shape == (B, N, 1) and classes.shape == (B, N, 1)
    assert jnp.allclose(boxes, rb)
    assert jnp.allclose(scores, rs)
    assert jnp.array_equal(classes, rc)

    # Native (lane-dense) layout path.
    nb, ns, nc = deepstream_output((pred,), tile_n=256, native_layout=True)
    jax.block_until_ready((nb, ns, nc))
    assert nb.shape == (B, 4, N) and ns.shape == (B, 1, N) and nc.shape == (B, 1, N)
    assert jnp.allclose(jnp.transpose(nb, (0, 2, 1)), rb)

    # Case 2: ragged N with the adaptive tile chooser (partial last tile:
    # out-of-bounds block reads ignored, out-of-bounds writes dropped).
    B2, N2 = 2, 400
    pred2 = jax.random.uniform(k1, (B2, N2, K), dtype=jnp.float32)
    outs2 = deepstream_output((pred2,))
    jax.block_until_ready(outs2)
    b2, s2, c2 = outs2
    rb2, rs2, rc2 = reference(pred2)
    assert jnp.allclose(b2, rb2)
    assert jnp.allclose(s2, rs2)
    assert jnp.array_equal(c2, rc2)

    # Case 3: bf16 predictions (halves HBM traffic); reductions/score multiply
    # run in f32 inside the kernel, boxes/scores stored back in bf16.
    B3, N3 = 1, 384
    pred3 = jax.random.uniform(k2, (B3, N3, K), dtype=jnp.float32).astype(jnp.bfloat16)
    outs3 = deepstream_output((pred3,))
    jax.block_until_ready(outs3)
    b3, s3, c3 = outs3
    rb3, rs3, rc3 = reference(pred3)
    assert b3.dtype == jnp.bfloat16 and s3.dtype == jnp.bfloat16 and c3.dtype == jnp.float32
    assert jnp.allclose(b3.astype(jnp.float32), rb3.astype(jnp.float32))
    assert jnp.allclose(s3.astype(jnp.float32), rs3.astype(jnp.float32), rtol=2e-2, atol=1e-3)
    assert jnp.array_equal(c3, rc3)

    print("KERNEL_OK")
</pallas_src>

<mosaic_0001>
module attributes {stable_mosaic.version = 11 : i64} {
  func.func @_deepstream_kernel(%arg0: i32, %arg1: i32, %arg2: memref<1x256x85xf32, #tpu.memory_space<vmem>>, %arg3: memref<1x4x256xf32, #tpu.memory_space<vmem>>, %arg4: memref<1x1x256xf32, #tpu.memory_space<vmem>>, %arg5: memref<1x1x256xf32, #tpu.memory_space<vmem>>) attributes {dimension_semantics = [#tpu.dimension_semantics<parallel>, #tpu.dimension_semantics<parallel>], iteration_bounds = array<i64: 2, 2>, scalar_prefetch = 0 : i64, scratch_operands = 0 : i64, tpu.core_type = #tpu.core_type<tc>, window_params = [{transform_indices = @transform_0, window_bounds = array<i64: 1, 256, 85>}, {transform_indices = @transform_1, window_bounds = array<i64: 1, 4, 256>}, {transform_indices = @transform_2, window_bounds = array<i64: 1, 1, 256>}, {transform_indices = @transform_3, window_bounds = array<i64: 1, 1, 256>}]} {
    %c0 = arith.constant 0 : index
    %c0_0 = arith.constant 0 : index
    %c0_1 = arith.constant 0 : index
    %0 = vector.load %arg2[%c0, %c0_0, %c0_1] : memref<1x256x85xf32, #tpu.memory_space<vmem>>, vector<1x256x85xf32>
    %1 = vector.shape_cast %0 : vector<1x256x85xf32> to vector<256x85xf32>
    %2 = tpu.iota {dimensions = array<i32: 1>} : vector<256x85xi32>
    %c5_i32 = arith.constant 5 : i32
    %3 = vector.broadcast %c5_i32 : i32 to vector<256x85xi32>
    %4 = arith.cmpi sge, %2, %3 : vector<256x85xi32>
    %cst = arith.constant 0xFF800000 : f32
    %5 = vector.broadcast %cst : f32 to vector<256x85xf32>
    %6 = arith.select %4, %1, %5 : vector<256x85xi1>, vector<256x85xf32>
    %cst_2 = arith.constant dense<0xFF800000> : vector<256xf32>
    %7 = vector.multi_reduction <maximumf>, %6, %cst_2 [1] : vector<256x85xf32> to vector<256xf32>
    %8 = vector.shape_cast %7 : vector<256xf32> to vector<256x1xf32>
    %9 = vector.broadcast %8 : vector<256x1xf32> to vector<256x85xf32>
    %10 = arith.cmpf oeq, %6, %9 : vector<256x85xf32>
    %c85_i32 = arith.constant 85 : i32
    %11 = vector.broadcast %c85_i32 : i32 to vector<256x85xi32>
    %12 = arith.select %10, %2, %11 : vector<256x85xi1>, vector<256x85xi32>
    %cst_3 = arith.constant dense<2147483647> : vector<256xi32>
    %13 = vector.multi_reduction <minsi>, %12, %cst_3 [1] : vector<256x85xi32> to vector<256xi32>
    %14 = vector.shape_cast %13 : vector<256xi32> to vector<256x1xi32>
    %c5_i32_4 = arith.constant 5 : i32
    %15 = vector.broadcast %c5_i32_4 : i32 to vector<256x1xi32>
    %16 = arith.subi %14, %15 : vector<256x1xi32>
    %17 = arith.sitofp %16 : vector<256x1xi32> to vector<256x1xf32>
    %18 = vector.extract_strided_slice %1 {offsets = [0, 4], sizes = [256, 1], strides = [1, 1]} : vector<256x85xf32> to vector<256x1xf32>
    %19 = arith.mulf %8, %18 : vector<256x1xf32>
    %20 = vector.extract_strided_slice %1 {offsets = [0, 0], sizes = [256, 4], strides = [1, 1]} : vector<256x85xf32> to vector<256x4xf32>
    %cst_5 = arith.constant 0.000000e+00 : f32
    %21 = vector.broadcast %cst_5 : f32 to vector<256x2xf32>
    %22 = tpu.concatenate %20, %19, %17, %21 in 1 : vector<256x4xf32>, vector<256x1xf32>, vector<256x1xf32>, vector<256x2xf32> -> vector<256x8xf32>
    %23 = tpu.transpose %22, [1, 0] : vector<256x8xf32> -> vector<8x256xf32>
    %24 = vector.extract_strided_slice %23 {offsets = [0, 0], sizes = [4, 256], strides = [1, 1]} : vector<8x256xf32> to vector<4x256xf32>
    %c0_6 = arith.constant 0 : index
    %c0_7 = arith.constant 0 : index
    %c0_8 = arith.constant 0 : index
    %25 = vector.load %arg3[%c0_6, %c0_7, %c0_8] : memref<1x4x256xf32, #tpu.memory_space<vmem>>, vector<1x4x256xf32>
    %26 = vector.shape_cast %25 : vector<1x4x256xf32> to vector<4x256xf32>
    %27 = vector.shape_cast %24 : vector<4x256xf32> to vector<1x4x256xf32>
    tpu.vector_store %arg3[%c0_6, %c0_7, %c0_8], %27 {strides = array<i32>} : memref<1x4x256xf32, #tpu.memory_space<vmem>>, vector<1x4x256xf32>,
    %28 = vector.extract_strided_slice %23 {offsets = [4, 0], sizes = [1, 256], strides = [1, 1]} : vector<8x256xf32> to vector<1x256xf32>
    %c0_9 = arith.constant 0 : index
    %c0_10 = arith.constant 0 : index
    %c0_11 = arith.constant 0 : index
    %29 = vector.load %arg4[%c0_9, %c0_10, %c0_11] : memref<1x1x256xf32, #tpu.memory_space<vmem>>, vector<1x1x256xf32>
    %30 = vector.shape_cast %29 : vector<1x1x256xf32> to vector<1x256xf32>
    %31 = vector.shape_cast %28 : vector<1x256xf32> to vector<1x1x256xf32>
    tpu.vector_store %arg4[%c0_9, %c0_10, %c0_11], %31 {strides = array<i32>} : memref<1x1x256xf32, #tpu.memory_space<vmem>>, vector<1x1x256xf32>,
    %32 = vector.extract_strided_slice %23 {offsets = [5, 0], sizes = [1, 256], strides = [1, 1]} : vector<8x256xf32> to vector<1x256xf32>
    %c0_12 = arith.constant 0 : index
    %c0_13 = arith.constant 0 : index
    %c0_14 = arith.constant 0 : index
    %33 = vector.load %arg5[%c0_12, %c0_13, %c0_14] : memref<1x1x256xf32, #tpu.memory_space<vmem>>, vector<1x1x256xf32>
    %34 = vector.shape_cast %33 : vector<1x1x256xf32> to vector<1x256xf32>
    %35 = vector.shape_cast %32 : vector<1x256xf32> to vector<1x1x256xf32>
    tpu.vector_store %arg5[%c0_12, %c0_13, %c0_14], %35 {strides = array<i32>} : memref<1x1x256xf32, #tpu.memory_space<vmem>>, vector<1x1x256xf32>,
    return
  }
  func.func @transform_0(%arg0: i32, %arg1: i32) -> (i32, i32, i32) {
    %c0_i32 = arith.constant 0 : i32
    %c0_i32_0 = arith.constant 0 : i32
    return %arg1, %arg0, %c0_i32 : i32, i32, i32
  }
  func.func @transform_1(%arg0: i32, %arg1: i32) -> (i32, i32, i32) {
    %c0_i32 = arith.constant 0 : i32
    %c0_i32_0 = arith.constant 0 : i32
    return %arg1, %c0_i32, %arg0 : i32, i32, i32
  }
  func.func @transform_2(%arg0: i32, %arg1: i32) -> (i32, i32, i32) {
    %c0_i32 = arith.constant 0 : i32
    %c0_i32_0 = arith.constant 0 : i32
    return %arg1, %c0_i32, %arg0 : i32, i32, i32
  }
  func.func @transform_3(%arg0: i32, %arg1: i32) -> (i32, i32, i32) {
    %c0_i32 = arith.constant 0 : i32
    %c0_i32_0 = arith.constant 0 : i32
    return %arg1, %c0_i32, %arg0 : i32, i32, i32
  }
}

</mosaic_0001>

<bundles_post_ra>
// kernel: tpu_custom_call.1
= control target key start
LH: loop header
LB: loop body
LE: loop exit
PB: predicated region body
PF: predicated region fallthrough
CT: control target
= control target key end

     0   :  { %s2997_s0 = inlined_call_operand.vmem [shape: f32[2,512,85], index: 0, kind: input, shape index: {}]   ;;  %s2998_s1 = inlined_call_operand.hbm [shape: f32[2,4,512], index: 1, kind: output, shape index: {0}]   ;;  %s2999_s2 = inlined_call_operand.hbm [shape: f32[2,1,512], index: 2, kind: output, shape index: {1}]   ;;  %s3000_s3 = inlined_call_operand.hbm [shape: f32[2,1,512], index: 3, kind: output, shape index: {2}]  }
   0x1   :  { %3046 = sst [smem:[#allocation52_spill]] %s2997_s0 }
   0x2   :  { %9 = vsyncpa [#allocation3], 0 }
   0x3   :  { %11 = vsyncpa [#allocation3 + $0x1], 0 }
   0x4   :  { %12 = vsyncpa [#allocation5], 0 }
   0x5   :  { %14 = vsyncpa [#allocation5 + $0x1], 0  ;;  %s1765_s12 = smov 0   ;;  %s1767_s13 = smov 0  }
   0x6   :  { %s1769_s14 = smov 0   ;;  %s1771_s15 = smov 0  }
   0x7   :  { %s1773_s16 = smov 0   ;;  %s1775_s17 = smov 0  }
   0x8   :  { %s1777_s18 = smov 0   ;;  %s1779_s19 = smov 0  }
   0x9 LB: > { %s1421_s20 = sadd.s32 4294967295, %s1743_s19   ;;  %s3044_s21 = sadd.s32 4294967294, %s1743_s19   ;;  %s1743_s19 = sphi %s1779_s19, %s20_s19   ;;  %s1739_s18 = sphi %s1777_s18, %s3148_s18   ;;  %s1735_s17 = sphi %s1775_s17, %s3147_s17   ;;  %s1731_s16 = sphi %s1773_s16, %s3146_s16   ;;  %s1727_s15 = sphi %s1771_s15, %s3145_s15   ;;  %s1723_s14 = sphi %s1769_s14, %s3144_s14   ;;  %s1719_s13 = sphi %s1767_s13, %s3143_s13   ;;  %s1715_s12 = sphi %s1765_s12, %s3142_s12  }
   0xa   : > { %s29_s22 = sadd.s32 1, %s1735_s17  ;;  %s32_s23 = sadd.s32 1, %s1739_s18 }
   0xb   : > { %p30_p0 = scmp.ge.s32.totalorder %s29_s22, 2  ;;  %p79_p1 = scmp.ne.s32.totalorder %s1723_s14, %s1719_s13 }
   0xc   : > { %p80_p2 = scmp.eq.s32.totalorder %s1421_s20, 3  ;;  %p85_p5 = scmp.ne.s32.totalorder %s1719_s13, %s1715_s12 }
   0xd   : > { %s3150_s22 = smov (%p30_p0, %s29_s22), 0  ;;  %s3152_s23 = smov (!%p30_p0, %s32_s23), %s1739_s18 }
   0xe   : > { %s64_s24 = ssub.s32 %s1735_s17, %s3150_s22  ;;  %p1818_p3 = por %p80_p2, %p79_p1 }
   0xf   : > { %p34_p4 = scmp.ge.s32.totalorder %s3152_s23, 2  ;;  %p86_p6 = scmp.eq.s32.totalorder %s3044_s21, 3 }
  0x10   : > { %p1425_p7 = scmp.ge.s32.totalorder %s1743_s19, 1  ;;  %p173_p9 = scmp.lt.s32.totalorder %s1743_s19, 5 }
  0x11   : > { %s3154_s23 = smov (%p34_p4, %s3152_s23), 0  ;;  %p1829_p8 = por %p86_p6, %p85_p5 }
  0x12   : > { %3048 = sst [smem:[#allocation9_spill]] %s3154_s23  ;;  %s65_s27 = ssub.s32 %s1739_s18, %s3154_s23 }
  0x13   : > { %s69_s28 = sadd.s32 1, %s1723_s14  ;;  %s66_s29 = sor.u32 %s65_s27, %s64_s24 }
  0x14   : > { %p174_p10 = pnand %p1425_p7, %p173_p9  ;;  %p67_p11 = scmp.eq.s32.totalorder %s66_s29, 0 }
  0x16   : > { %s1838_s30 = scalar_select %p67_p11, %s1723_s14, %s69_s28  }
  0x17   : > { %177 = sbr.rel (%p174_p10) target bundleno = 737 (0x2e1), region = 24 }
  0x1c   : > { %s1429_s4 = sshll.u32 %s1731_s16, 5  ;;  %p212_p12 = scmp.lt.s32.totalorder %s1727_s15, 1  ;;  %v3001_v0 = vlaneseq  ;;  %vm291_vm1 = vcmask 695296  }
  0x1d   : > { %p214_p13 = scmp.lt.s32.totalorder %s1429_s4, 63  ;;  %s3050_s0 = sld [smem:[#allocation52_spill]] }
  0x1e   : > { %s213_s5 = scalar_select %p212_p12, %s1727_s15, 1  ;;  %v1844_v1 = vand.u32 127, %v3001_v0 }
  0x1f   : > { %s3156_s4 = smov (!%p214_p13, %s1429_s4), 63  ;;  %s1467_s24 = sshll.u32 %s1731_s16, 1 }
  0x20   : > { %s1430_s6 = sshll.u32 %s213_s5, 6  ;;  %vm258_vm0 = vcmp.ge.s32.totalorder %v1844_v1, 5  ;;  %s1468_s27 = sshll.u32 %s1727_s15, 2 }
  0x21   : > { %s217_s7 = sadd.s32 %s1430_s6, %s3156_s4  ;;  %s2895_s28 = sadd.s32 %s1468_s27, %s1467_s24 }
  0x22   : > { %s1431_s8 = sshll.u32 %s217_s7, 3  ;;  %s2898_s29 = sand.u32 1, %s1719_s13  }
  0x23   : > { %s1850_s11 = scalar_lea.vmem %s3050_s0, %s1431_s8  ;;  %s1469_s4 = sshll.u32 %s2895_s28, 2 }
  0x24   : > { %v228_v2 = vld [vmem:[%s1850_s11 + $0x20] sm:$0xff]  ;;  %v226_v3 = vld [vmem:[%s1850_s11 + $0x10] sm:$0xff]  ;;  %v229_v11 = vld [vmem:[%s1850_s11 + $0x28] sm:$0xff]  ;;  %s1426_s5 = sshll.u32 %s2898_s29, 3  ;;  %s1238_s8 = scalar_lea.hbm %s2998_s1, %s1469_s4 }
  0x25   : > { %v224_v4 = vld [vmem:[%s1850_s11] sm:$0xff]  ;;  %v1857_v5 = vsel %vm258_vm0, %v228_v2, -inf  ;;  %v1861_v6 = vsel %vm258_vm0, %v226_v3, -inf  ;;  %v227_v12 = vld [vmem:[%s1850_s11 + $0x18] sm:$0xff]  ;;  %v225_v13 = vld [vmem:[%s1850_s11 + $0x8] sm:$0xff]  ;;  %v1878_v14 = vsel %vm258_vm0, %v229_v11, -inf  ;;  %s1254_s27 = scalar_lea.hbm %s2999_s2, %s2895_s28 }
  0x26   : > { %v1865_v7 = vsel %vm258_vm0, %v224_v4, -inf  ;;  %v304_v8 = vsel %vm291_vm1, %v1857_v5, -inf  ;;  %v298_v9 = vsel %vm291_vm1, %v1861_v6, -inf  ;;  %v1882_v15 = vsel %vm258_vm0, %v227_v12, -inf  ;;  %v232_v20 = vld [vmem:[%s1850_s11 + $0x40] sm:$0xff]  ;;  %v231_v21 = vld [vmem:[%s1850_s11 + $0x38] sm:$0xff] }
  0x27   : > { %v292_v10 = vsel %vm291_vm1, %v1865_v7, -inf  ;;  %305 = vmax.xlane.f32.xlu2 %v304_v8  ;;  %299 = vmax.xlane.f32.xlu1 %v298_v9  ;;  %v1886_v16 = vsel %vm258_vm0, %v225_v13, -inf  ;;  %v307_v17 = vsel %vm291_vm1, %v1878_v14, -inf  ;;  %v301_v18 = vsel %vm291_vm1, %v1882_v15, -inf  ;;  %v230_v22 = vld [vmem:[%s1850_s11 + $0x30] sm:$0xff]  ;;  %v235_v29 = vld [vmem:[%s1850_s11 + $0x58] sm:$0xff] }
  0x28   : > { %293 = vmax.xlane.f32.xlu0 %v292_v10  ;;  %v295_v19 = vsel %vm291_vm1, %v1886_v16, -inf  ;;  %v1899_v23 = vsel %vm258_vm0, %v232_v20, -inf  ;;  %v1903_v24 = vsel %vm258_vm0, %v231_v21, -inf  ;;  %v1907_v25 = vsel %vm258_vm0, %v230_v22, -inf  ;;  %v234_v30 = vld [vmem:[%s1850_s11 + $0x50] sm:$0xff]  ;;  %v233_v31 = vld [vmem:[%s1850_s11 + $0x48] sm:$0xff] }
  0x29   : > { %v316_v26 = vsel %vm291_vm1, %v1899_v23, -inf  ;;  %v313_v27 = vsel %vm291_vm1, %v1903_v24, -inf  ;;  %v310_v28 = vsel %vm291_vm1, %v1907_v25, -inf  ;;  %v1920_v32 = vsel %vm258_vm0, %v235_v29, -inf  ;;  %v238_v38 = vld [vmem:[%s1850_s11 + $0x70] sm:$0xff]  ;;  %v237_v39 = vld [vmem:[%s1850_s11 + $0x68] sm:$0xff] }
  0x2a   : > { %v1924_v33 = vsel %vm258_vm0, %v234_v30, -inf  ;;  %v1928_v34 = vsel %vm258_vm0, %v233_v31, -inf  ;;  %v325_v35 = vsel %vm291_vm1, %v1920_v32, -inf  ;;  %v236_v40 = vld [vmem:[%s1850_s11 + $0x60] sm:$0xff]  ;;  %v1941_v41 = vsel %vm258_vm0, %v238_v38, -inf  ;;  %v241_v47 = vld [vmem:[%s1850_s11 + $0x88] sm:$0xff] }
  0x2b   : > { %v322_v36 = vsel %vm291_vm1, %v1924_v33, -inf  ;;  %v319_v37 = vsel %vm291_vm1, %v1928_v34, -inf  ;;  %v1945_v42 = vsel %vm258_vm0, %v237_v39, -inf  ;;  %v1949_v43 = vsel %vm258_vm0, %v236_v40, -inf  ;;  %v240_v48 = vld [vmem:[%s1850_s11 + $0x80] sm:$0xff]  ;;  %v239_v49 = vld [vmem:[%s1850_s11 + $0x78] sm:$0xff] }
  0x2c   : > { %v334_v44 = vsel %vm291_vm1, %v1941_v41, -inf  ;;  %v331_v45 = vsel %vm291_vm1, %v1945_v42, -inf  ;;  %v328_v46 = vsel %vm291_vm1, %v1949_v43, -inf  ;;  %v1962_v50 = vsel %vm258_vm0, %v241_v47, -inf  ;;  %v244_v56 = vld [vmem:[%s1850_s11 + $0xa0] sm:$0xff]  ;;  %v243_v57 = vld [vmem:[%s1850_s11 + $0x98] sm:$0xff] }
  0x2d   : > { %v1966_v51 = vsel %vm258_vm0, %v240_v48, -inf  ;;  %v1970_v52 = vsel %vm258_vm0, %v239_v49, -inf  ;;  %v343_v53 = vsel %vm291_vm1, %v1962_v50, -inf  ;;  %v242_v58 = vld [vmem:[%s1850_s11 + $0x90] sm:$0xff]  ;;  %v1983_v59 = vsel %vm258_vm0, %v244_v56, -inf  ;;  %v247_v3 = vld [vmem:[%s1850_s11 + $0xb8] sm:$0xff] }
  0x2e   : > { %v340_v54 = vsel %vm291_vm1, %v1966_v51, -inf  ;;  %v337_v55 = vsel %vm291_vm1, %v1970_v52, -inf  ;;  %v1987_v60 = vsel %vm258_vm0, %v243_v57, -inf  ;;  %v1991_v61 = vsel %vm258_vm0, %v242_v58, -inf  ;;  %v246_v4 = vld [vmem:[%s1850_s11 + $0xb0] sm:$0xff]  ;;  %v245_v8 = vld [vmem:[%s1850_s11 + $0xa8] sm:$0xff] }
  0x2f   : > { %308 = vmax.xlane.f32.xlu2 %v307_v17  ;;  %302 = vmax.xlane.f32.xlu1 %v301_v18  ;;  %v352_v62 = vsel %vm291_vm1, %v1983_v59, -inf  ;;  %v349_v63 = vsel %vm291_vm1, %v1987_v60, -inf  ;;  %v346_v2 = vsel %vm291_vm1, %v1991_v61, -inf  ;;  %v2004_v9 = vsel %vm258_vm0, %v247_v3, -inf  ;;  %v250_v18 = vld [vmem:[%s1850_s11 + $0xd0] sm:$0xff]  ;;  %v248_v20 = vld [vmem:[%s1850_s11 + $0xc0] sm:$0xff] }
  0x30   : > { %296 = vmax.xlane.f32.xlu0 %v295_v19  ;;  %v2008_v10 = vsel %vm258_vm0, %v246_v4, -inf  ;;  %v2012_v11 = vsel %vm258_vm0, %v245_v8, -inf  ;;  %v361_v12 = vsel %vm291_vm1, %v2004_v9, -inf  ;;  %v249_v19 = vld [vmem:[%s1850_s11 + $0xc8] sm:$0xff]  ;;  %v2025_v21 = vsel %vm258_vm0, %v250_v18, -inf  ;;  %v252_v30 = vld [vmem:[%s1850_s11 + $0xe0] sm:$0xff] }
  0x31   : > { %v358_v13 = vsel %vm291_vm1, %v2008_v10, -inf  ;;  %v355_v17 = vsel %vm291_vm1, %v2012_v11, -inf  ;;  %v2029_v22 = vsel %vm258_vm0, %v249_v19, -inf  ;;  %v253_v31 = vld [vmem:[%s1850_s11 + $0xe8] sm:$0xff]  ;;  %v255_v48 = vld [vmem:[%s1850_s11 + $0xf8] sm:$0xff]  ;;  %s196_s9 = scalar_lea.vmem [#allocation2], %s1426_s5 }
  0x32   : > { %v2072_v49 = vsel %vm258_vm0, %v255_v48, -inf  ;;  %s1240_s10 = sshll.u32 %s196_s9, 4  ;;  %s1242_s16 = sshll.u32 %s1238_s8, 4  ;;  %s1241_s10 = int_to_ptr.vmem [resolvable:$true] %s1240_s10  ;;  %s1243_s16 = int_to_ptr.hbm [resolvable:$true] %s1242_s16 }
  0x33   : > { %s2912_s6 = sand.u32 1, %s1421_s20   ;;  %s1215_s4 = scalar_lea.sflag [#allocation3], %s2898_s29 }
  0x34   : > { %s1603_s5 = sshra.s32 %s1243_s16, 4  ;;  %s1609_s15 = scalar_lea.hbm %s2998_s1, 32  ;;  %s1604_s5 = int_to_ptr.hbm [resolvable:$true] %s1603_s5 }
  0x35   : > { %s1605_s7 = scalar_lea.hbm %s1604_s5, 8  ;;  %p1610_p4 = scmp.lt.s32.totalorder %s1604_s5, %s2998_s1 }
  0x36   : > { %p1606_p0 = scmp.ne.s32.totalorder %s1604_s5, %s1605_s7  ;;  %p1611_p5 = scmp.lt.s32.totalorder %s1609_s15, %s1605_s7 }
  0x37   : > { %317 = vmax.xlane.f32.xlu2 %v316_v26  ;;  %314 = vmax.xlane.f32.xlu1 %v313_v27  ;;  %v2033_v26 = vsel %vm258_vm0, %v248_v20, -inf  ;;  %v370_v27 = vsel %vm291_vm1, %v2025_v21, -inf }
  0x38   : > { %311 = vmax.xlane.f32.xlu0 %v310_v28  ;;  %v367_v28 = vsel %vm291_vm1, %v2029_v22, -inf  ;;  %v364_v29 = vsel %vm291_vm1, %v2033_v26, -inf  ;;  %p1607_p1 = pnand %p1606_p0, %p1818_p3  ;;  %p1612_p6 = por %p1611_p5, %p1610_p4 }
  0x3a   : > { %p1608_p2 = pneg %p1607_p1 }
  0x3c   : > { %p1613_p7 = pnand %p1612_p6, %p1608_p2 }
  0x3f   : > { %326 = vmax.xlane.f32.xlu2 %v325_v35  ;;  %323 = vmax.xlane.f32.xlu1 %v322_v36  ;;  %v251_v35 = vld [vmem:[%s1850_s11 + $0xd8] sm:$0xff]  ;;  %v2046_v36 = vsel %vm258_vm0, %v252_v30, -inf }
  0x40   : > { %320 = vmax.xlane.f32.xlu0 %v319_v37  ;;  %v2050_v37 = vsel %vm258_vm0, %v253_v31, -inf  ;;  %v2054_v38 = vsel %vm258_vm0, %v251_v35, -inf  ;;  %v376_v39 = vsel %vm291_vm1, %v2046_v36, -inf }
  0x41   : > { %v379_v40 = vsel %vm291_vm1, %v2050_v37, -inf }
  0x47   : > { %335 = vmax.xlane.f32.xlu2 %v334_v44  ;;  %332 = vmax.xlane.f32.xlu1 %v331_v45  ;;  %v373_v44 = vsel %vm291_vm1, %v2054_v38, -inf  ;;  %v254_v45 = vld [vmem:[%s1850_s11 + $0xf0] sm:$0xff] }
  0x48   : > { %329 = vmax.xlane.f32.xlu0 %v328_v46  ;;  %v2065_v46 = vsel %vm258_vm0, %v254_v45, -inf }
  0x49   : > { %3051 = vst [vmem:[#allocation10_spill] sm:$0xff] %v2065_v46  ;;  %v382_v47 = vsel %vm291_vm1, %v2065_v46, -inf }
  0x4f   : > { %344 = vmax.xlane.f32.xlu2 %v343_v53  ;;  %341 = vmax.xlane.f32.xlu1 %v340_v54  ;;  %v385_v53 = vsel %vm291_vm1, %v2072_v49, -inf }
  0x50   : > { %338 = vmax.xlane.f32.xlu0 %v337_v55 }
  0x57   : > { %353 = vmax.xlane.f32.xlu2 %v352_v62  ;;  %350 = vmax.xlane.f32.xlu1 %v349_v63 }
  0x58   : > { %347 = vmax.xlane.f32.xlu0 %v346_v2 }
  0x5f   : > { %362 = vmax.xlane.f32.xlu2 %v361_v12  ;;  %359 = vmax.xlane.f32.xlu1 %v358_v13 }
  0x60   : > { %356 = vmax.xlane.f32.xlu0 %v355_v17 }
  0x67   : > { %371 = vmax.xlane.f32.xlu2 %v370_v27  ;;  %368 = vmax.xlane.f32.xlu1 %v367_v28 }
  0x68   : > { %365 = vmax.xlane.f32.xlu0 %v364_v29 }
  0x6f   : > { %377 = vmax.xlane.f32.xlu1 %v376_v39  ;;  %380 = vmax.xlane.f32.xlu2 %v379_v40 }
  0x70   : > { %374 = vmax.xlane.f32.xlu0 %v373_v44 }
  0x77   : > { %386 = vmax.xlane.f32.xlu1 %v385_v53 }
  0x78   : > { %383 = vmax.xlane.f32.xlu0 %v382_v47 }
  0x9a   : > { %v2076_v54 = vpop.xlane.xlu2 %305  ;;  %v2078_v55 = vpop.xlane.xlu1 %299 }
  0x9b   : > { %3052 = vst [vmem:[#allocation11_spill] sm:$0xff] %v2076_v54  ;;  %vm390_vm2 = vcmp.eq.f32.partialorder %v1861_v6, %v2078_v55  ;;  %v2082_v56 = vpop.xlane.xlu0 %293  ;;  %vm392_vm4 = vcmp.eq.f32.partialorder %v1857_v5, %v2076_v54 }
  0x9c   : > { %3053 = vst [vmem:[#allocation12_spill] sm:$0xff] %v2078_v55  ;;  %v422_v57 = vsel %vm390_vm2, %v1844_v1, 85  ;;  %vm388_vm3 = vcmp.eq.f32.partialorder %v1865_v7, %v2082_v56 }
  0x9d   : > { %3054 = vst [vmem:[#allocation13_spill] sm:$0xff] %v2082_v56  ;;  %v420_v58 = vsel %vm388_vm3, %v1844_v1, 85  ;;  %v2089_v62 = vsel %vm291_vm1, %v422_v57, 2147483647 }
  0x9e   : > { %v484_v63 = vshra.s32 %v2089_v62, 16  ;;  %v2093_v2 = vsel %vm291_vm1, %v420_v58, 2147483647 }
  0x9f   : > { %v454_v3 = vshra.s32 %v2093_v2, 16 }
  0xa0   : > { %v2096_v6 = vcvt.s32.f32 %v484_v63 }
  0xa1   : > { %v2098_v4 = vcvt.s32.f32 %v454_v3 }
  0xa2   : > { %v2100_v8 = vpop.xlane.xlu2 %308  ;;  %v2102_v12 = vpop.xlane.xlu1 %302  ;;  %487 = vmin.xlane.f32.xlu0 %v2096_v6 }
  0xa3   : > { %3055 = vst [vmem:[#allocation14_spill] sm:$0xff] %v2100_v8  ;;  %vm393_vm5 = vcmp.eq.f32.partialorder %v1878_v14, %v2100_v8  ;;  %vm391_vm6 = vcmp.eq.f32.partialorder %v1882_v15, %v2102_v12  ;;  %457 = vmin.xlane.f32.xlu2 %v2098_v4  ;;  %v2112_v7 = vpop.xlane.xlu0 %296  ;;  %v424_v15 = vsel %vm392_vm4, %v1844_v1, 85 }
  0xa4   : > { %3056 = vst [vmem:[#allocation15_spill] sm:$0xff] %v2102_v12  ;;  %v425_v13 = vsel %vm393_vm5, %v1844_v1, 85  ;;  %v423_v17 = vsel %vm391_vm6, %v1844_v1, 85  ;;  %vm389_vm7 = vcmp.eq.f32.partialorder %v1886_v16, %v2112_v7  ;;  %v2139_v31 = vsel %vm291_vm1, %v424_v15, 2147483647 }
  0xa5   : > { %3057 = vst [vmem:[#allocation16_spill] sm:$0xff] %v2112_v7  ;;  %v421_v18 = vsel %vm389_vm7, %v1844_v1, 85  ;;  %v2120_v5 = vsel %vm291_vm1, %v425_v13, 2147483647  ;;  %v2123_v14 = vsel %vm291_vm1, %v423_v17, 2147483647 }
  0xa6   : > { %v529_v19 = vshra.s32 %v2120_v5, 16  ;;  %v499_v20 = vshra.s32 %v2123_v14, 16  ;;  %v2129_v27 = vsel %vm291_vm1, %v421_v18, 2147483647  ;;  %v514_v45 = vshra.s32 %v2139_v31, 16 }
  0xa7   : > { %v469_v28 = vshra.s32 %v2129_v27, 16 }
  0xa8   : > { %v2132_v16 = vcvt.s32.f32 %v529_v19  ;;  %v2134_v29 = vcvt.s32.f32 %v499_v20  ;;  %v2170_v63 = vcvt.s32.f32 %v514_v45 }
  0xa9   : > { %v2136_v30 = vcvt.s32.f32 %v469_v28 }
  0xaa   : > { %v2141_v35 = vpop.xlane.xlu2 %317  ;;  %v2143_v39 = vpop.xlane.xlu1 %314  ;;  %532 = vmin.xlane.f32.xlu0 %v2132_v16 }
  0xab   : > { %3058 = vst [vmem:[#allocation17_spill] sm:$0xff] %v2141_v35  ;;  %vm396_vm8 = vcmp.eq.f32.partialorder %v1899_v23, %v2141_v35  ;;  %vm395_vm9 = vcmp.eq.f32.partialorder %v1903_v24, %v2143_v39  ;;  %502 = vmin.xlane.f32.xlu2 %v2134_v29  ;;  %v2151_v40 = vpop.xlane.xlu0 %311  ;;  %472 = vmin.xlane.f32.xlu1 %v2136_v30 }
  0xac   : > { %3059 = vst [vmem:[#allocation18_spill] sm:$0xff] %v2143_v39  ;;  %v428_v44 = vsel %vm396_vm8, %v1844_v1, 85  ;;  %vm394_vm10 = vcmp.eq.f32.partialorder %v1907_v25, %v2151_v40  ;;  %v427_v24 = vsel %vm395_vm9, %v1844_v1, 85 }
  0xad   : > { %3060 = vst [vmem:[#allocation19_spill] sm:$0xff] %v2151_v40  ;;  %v426_v47 = vsel %vm394_vm10, %v1844_v1, 85  ;;  %v2160_v23 = vsel %vm291_vm1, %v428_v44, 2147483647  ;;  %v2175_v3 = vsel %vm291_vm1, %v427_v24, 2147483647 }
  0xae   : > { %v574_v48 = vshra.s32 %v2160_v23, 16  ;;  %v2165_v53 = vsel %vm291_vm1, %v426_v47, 2147483647  ;;  %v559_v19 = vshra.s32 %v2175_v3, 16 }
  0xaf   : > { %v544_v57 = vshra.s32 %v2165_v53, 16 }
  0xb0   : > { %v2168_v58 = vcvt.s32.f32 %v574_v48  ;;  %v2206_v24 = vcvt.s32.f32 %v559_v19 }
  0xb1   : > { %v2172_v25 = vcvt.s32.f32 %v544_v57 }
  0xb2   : > { %v2177_v13 = vpop.xlane.xlu2 %326  ;;  %v2179_v17 = vpop.xlane.xlu1 %323  ;;  %577 = vmin.xlane.f32.xlu0 %v2168_v58 }
  0xb3   : > { %3061 = vst [vmem:[#allocation20_spill] sm:$0xff] %v2177_v13  ;;  %vm399_vm11 = vcmp.eq.f32.partialorder %v1920_v32, %v2177_v13  ;;  %vm398_vm12 = vcmp.eq.f32.partialorder %v1924_v33, %v2179_v17  ;;  %547 = vmin.xlane.f32.xlu2 %v2172_v25  ;;  %v2187_v18 = vpop.xlane.xlu0 %320  ;;  %517 = vmin.xlane.f32.xlu1 %v2170_v63 }
  0xb4   : > { %3062 = vst [vmem:[#allocation21_spill] sm:$0xff] %v2179_v17  ;;  %v431_v15 = vsel %vm399_vm11, %v1844_v1, 85  ;;  %vm397_vm13 = vcmp.eq.f32.partialorder %v1928_v34, %v2187_v18  ;;  %v430_v33 = vsel %vm398_vm12, %v1844_v1, 85 }
  0xb5   : > { %3063 = vst [vmem:[#allocation22_spill] sm:$0xff] %v2187_v18  ;;  %v429_v20 = vsel %vm397_vm13, %v1844_v1, 85  ;;  %v2196_v32 = vsel %vm291_vm1, %v431_v15, 2147483647  ;;  %v2211_v48 = vsel %vm291_vm1, %v430_v33, 2147483647 }
  0xb6   : > { %v619_v28 = vshra.s32 %v2196_v32, 16  ;;  %v2201_v44 = vsel %vm291_vm1, %v429_v20, 2147483647  ;;  %v604_v33 = vshra.s32 %v2211_v48, 16 }
  0xb7   : > { %v589_v45 = vshra.s32 %v2201_v44, 16 }
  0xb8   : > { %v2204_v47 = vcvt.s32.f32 %v619_v28 }
  0xb9   : > { %v2208_v34 = vcvt.s32.f32 %v589_v45 }
  0xba   : > { %v2213_v57 = vpop.xlane.xlu2 %335  ;;  %v2215_v15 = vpop.xlane.xlu1 %332  ;;  %622 = vmin.xlane.f32.xlu0 %v2204_v47 }
  0xbb   : > { %3064 = vst [vmem:[#allocation23_spill] sm:$0xff] %v2213_v57  ;;  %vm402_vm14 = vcmp.eq.f32.partialorder %v1941_v41, %v2213_v57  ;;  %vm401_vm15 = vcmp.eq.f32.partialorder %v1945_v42, %v2215_v15  ;;  %592 = vmin.xlane.f32.xlu2 %v2208_v34  ;;  %v2223_v19 = vpop.xlane.xlu0 %329  ;;  %562 = vmin.xlane.f32.xlu1 %v2206_v24  ;;  %v2242_v57 = vcvt.s32.f32 %v604_v33 }
  0xbc   : > { %3065 = vst [vmem:[#allocation24_spill] sm:$0xff] %v2215_v15  ;;  %v434_v20 = vsel %vm402_vm14, %v1844_v1, 85  ;;  %vm400_vm0 = vcmp.eq.f32.partialorder %v1949_v43, %v2223_v19  ;;  %v433_v42 = vsel %vm401_vm15, %v1844_v1, 85 }
  0xbd   : > { %3066 = vst [vmem:[#allocation25_spill] sm:$0xff] %v2223_v19  ;;  %v432_v28 = vsel %vm400_vm0, %v1844_v1, 85  ;;  %v2232_v41 = vsel %vm291_vm1, %v434_v20, 2147483647  ;;  %v2247_v19 = vsel %vm291_vm1, %v433_v42, 2147483647 }
  0xbe   : > { %v664_v45 = vshra.s32 %v2232_v41, 16  ;;  %v2237_v0 = vsel %vm291_vm1, %v432_v28, 2147483647  ;;  %v649_v28 = vshra.s32 %v2247_v19, 16 }
  0xbf   : > { %v634_v15 = vshra.s32 %v2237_v0, 16 }
  0xc0   : > { %v2240_v17 = vcvt.s32.f32 %v664_v45  ;;  %v2278_v13 = vcvt.s32.f32 %v649_v28 }
  0xc1   : > { %v2244_v43 = vcvt.s32.f32 %v634_v15 }
  0xc2   : > { %v2249_v20 = vpop.xlane.xlu2 %344  ;;  %v2251_v39 = vpop.xlane.xlu1 %341  ;;  %667 = vmin.xlane.f32.xlu0 %v2240_v17 }
  0xc3   : > { %3067 = vst [vmem:[#allocation26_spill] sm:$0xff] %v2249_v20  ;;  %vm405_vm2 = vcmp.eq.f32.partialorder %v1962_v50, %v2249_v20  ;;  %vm404_vm3 = vcmp.eq.f32.partialorder %v1966_v51, %v2251_v39  ;;  %637 = vmin.xlane.f32.xlu2 %v2244_v43  ;;  %v2259_v33 = vpop.xlane.xlu0 %338  ;;  %607 = vmin.xlane.f32.xlu1 %v2242_v57 }
  0xc4   : > { %3068 = vst [vmem:[#allocation27_spill] sm:$0xff] %v2251_v39  ;;  %v437_v15 = vsel %vm405_vm2, %v1844_v1, 85  ;;  %vm403_vm4 = vcmp.eq.f32.partialorder %v1970_v52, %v2259_v33  ;;  %v436_v51 = vsel %vm404_vm3, %v1844_v1, 85 }
  0xc5   : > { %3069 = vst [vmem:[#allocation28_spill] sm:$0xff] %v2259_v33  ;;  %v435_v42 = vsel %vm403_vm4, %v1844_v1, 85  ;;  %v2268_v50 = vsel %vm291_vm1, %v437_v15, 2147483647  ;;  %v2283_v33 = vsel %vm291_vm1, %v436_v51, 2147483647 }
  0xc6   : > { %v709_v45 = vshra.s32 %v2268_v50, 16  ;;  %v2273_v39 = vsel %vm291_vm1, %v435_v42, 2147483647  ;;  %v694_v42 = vshra.s32 %v2283_v33, 16 }
  0xc7   : > { %v679_v20 = vshra.s32 %v2273_v39, 16 }
  0xc8   : > { %v2276_v18 = vcvt.s32.f32 %v709_v45  ;;  %v2314_v35 = vcvt.s32.f32 %v694_v42 }
  0xc9   : > { %v2280_v52 = vcvt.s32.f32 %v679_v20 }
  0xca   : > { %v2285_v15 = vpop.xlane.xlu2 %353  ;;  %v2287_v54 = vpop.xlane.xlu1 %350  ;;  %712 = vmin.xlane.f32.xlu0 %v2276_v18 }
  0xcb   : > { %3070 = vst [vmem:[#allocation29_spill] sm:$0xff] %v2285_v15  ;;  %vm408_vm5 = vcmp.eq.f32.partialorder %v1983_v59, %v2285_v15  ;;  %vm407_vm6 = vcmp.eq.f32.partialorder %v1987_v60, %v2287_v54  ;;  %682 = vmin.xlane.f32.xlu2 %v2280_v52  ;;  %v2295_v28 = vpop.xlane.xlu0 %347  ;;  %652 = vmin.xlane.f32.xlu1 %v2278_v13 }
  0xcc   : > { %3071 = vst [vmem:[#allocation30_spill] sm:$0xff] %v2287_v54  ;;  %v440_v20 = vsel %vm408_vm5, %v1844_v1, 85  ;;  %vm406_vm7 = vcmp.eq.f32.partialorder %v1991_v61, %v2295_v28  ;;  %v439_v60 = vsel %vm407_vm6, %v1844_v1, 85 }
  0xcd   : > { %3072 = vst [vmem:[#allocation31_spill] sm:$0xff] %v2295_v28  ;;  %v438_v51 = vsel %vm406_vm7, %v1844_v1, 85  ;;  %v2304_v59 = vsel %vm291_vm1, %v440_v20, 2147483647  ;;  %v2319_v28 = vsel %vm291_vm1, %v439_v60, 2147483647 }
  0xce   : > { %v754_v45 = vshra.s32 %v2304_v59, 16  ;;  %v2309_v54 = vsel %vm291_vm1, %v438_v51, 2147483647  ;;  %v739_v51 = vshra.s32 %v2319_v28, 16 }
  0xcf   : > { %v724_v15 = vshra.s32 %v2309_v54, 16 }
  0xd0   : > { %v2312_v40 = vcvt.s32.f32 %v754_v45  ;;  %v2350_v8 = vcvt.s32.f32 %v739_v51 }
  0xd1   : > { %v2316_v61 = vcvt.s32.f32 %v724_v15 }
  0xd2   : > { %v2321_v20 = vpop.xlane.xlu2 %362  ;;  %v2323_v7 = vpop.xlane.xlu1 %359  ;;  %757 = vmin.xlane.f32.xlu0 %v2312_v40 }
  0xd3   : > { %3073 = vst [vmem:[#allocation32_spill] sm:$0xff] %v2321_v20  ;;  %vm411_vm8 = vcmp.eq.f32.partialorder %v2004_v9, %v2321_v20  ;;  %vm410_vm9 = vcmp.eq.f32.partialorder %v2008_v10, %v2323_v7  ;;  %727 = vmin.xlane.f32.xlu2 %v2316_v61  ;;  %v2331_v42 = vpop.xlane.xlu0 %356  ;;  %697 = vmin.xlane.f32.xlu1 %v2314_v35 }
  0xd4   : > { %3074 = vst [vmem:[#allocation33_spill] sm:$0xff] %v2323_v7  ;;  %v443_v15 = vsel %vm411_vm8, %v1844_v1, 85  ;;  %vm409_vm10 = vcmp.eq.f32.partialorder %v2012_v11, %v2331_v42  ;;  %v442_v10 = vsel %vm410_vm9, %v1844_v1, 85 }
  0xd5   : > { %3075 = vst [vmem:[#allocation34_spill] sm:$0xff] %v2331_v42  ;;  %v441_v60 = vsel %vm409_vm10, %v1844_v1, 85  ;;  %v2340_v9 = vsel %vm291_vm1, %v443_v15, 2147483647  ;;  %v2355_v42 = vsel %vm291_vm1, %v442_v10, 2147483647 }
  0xd6   : > { %v799_v45 = vshra.s32 %v2340_v9, 16  ;;  %v2345_v7 = vsel %vm291_vm1, %v441_v60, 2147483647  ;;  %3076 = vst [vmem:[#allocation35_spill] sm:$0xff] %v2355_v42  ;;  %v784_v60 = vshra.s32 %v2355_v42, 16 }
  0xd7   : > { %v769_v20 = vshra.s32 %v2345_v7, 16 }
  0xd8   : > { %v2348_v12 = vcvt.s32.f32 %v799_v45  ;;  %v2386_v46 = vcvt.s32.f32 %v784_v60 }
  0xd9   : > { %v2352_v11 = vcvt.s32.f32 %v769_v20 }
  0xda   : > { %v2357_v15 = vpop.xlane.xlu2 %371  ;;  %v2359_v56 = vpop.xlane.xlu1 %368  ;;  %802 = vmin.xlane.f32.xlu0 %v2348_v12  ;;  %3080 = vst [vmem:[#allocation39_spill] sm:$0xff] %v2386_v46 }
  0xdb   : > { %3077 = vst [vmem:[#allocation36_spill] sm:$0xff] %v2357_v15  ;;  %vm414_vm11 = vcmp.eq.f32.partialorder %v2025_v21, %v2357_v15  ;;  %vm413_vm12 = vcmp.eq.f32.partialorder %v2029_v22, %v2359_v56  ;;  %772 = vmin.xlane.f32.xlu2 %v2352_v11  ;;  %v2367_v51 = vpop.xlane.xlu0 %365  ;;  %742 = vmin.xlane.f32.xlu1 %v2350_v8 }
  0xdc   : > { %3078 = vst [vmem:[#allocation37_spill] sm:$0xff] %v2359_v56  ;;  %v446_v20 = vsel %vm414_vm11, %v1844_v1, 85  ;;  %vm412_vm13 = vcmp.eq.f32.partialorder %v2033_v26, %v2367_v51  ;;  %v445_v22 = vsel %vm413_vm12, %v1844_v1, 85 }
  0xdd   : > { %3079 = vst [vmem:[#allocation38_spill] sm:$0xff] %v2367_v51  ;;  %v444_v10 = vsel %vm412_vm13, %v1844_v1, 85  ;;  %v2376_v21 = vsel %vm291_vm1, %v446_v20, 2147483647  ;;  %v2391_v51 = vsel %vm291_vm1, %v445_v22, 2147483647 }
  0xde   : > { %v844_v45 = vshra.s32 %v2376_v21, 16  ;;  %v2381_v56 = vsel %vm291_vm1, %v444_v10, 2147483647  ;;  %3082 = vst [vmem:[#allocation41_spill] sm:$0xff] %v2391_v51  ;;  %v829_v60 = vshra.s32 %v2391_v51, 16 }
  0xdf   : > { %v814_v15 = vshra.s32 %v2381_v56, 16 }
  0xe0   : > { %v2384_v55 = vcvt.s32.f32 %v844_v45 }
  0xe1   : > { %v2388_v26 = vcvt.s32.f32 %v814_v15 }
  0xe2   : > { %v2393_v20 = vpop.xlane.xlu1 %377  ;;  %847 = vmin.xlane.f32.xlu0 %v2384_v55  ;;  %v2396_v42 = vpop.xlane.xlu2 %380 }
  0xe3   : > { %3081 = vst [vmem:[#allocation40_spill] sm:$0xff] %v2388_v26  ;;  %vm416_vm14 = vcmp.eq.f32.partialorder %v2046_v36, %v2393_v20  ;;  %817 = vmin.xlane.f32.xlu2 %v2388_v26  ;;  %v2401_v10 = vpop.xlane.xlu0 %374  ;;  %vm417_vm15 = vcmp.eq.f32.partialorder %v2050_v37, %v2396_v42  ;;  %787 = vmin.xlane.f32.xlu1 %v2386_v46  ;;  %v2422_v26 = vcvt.s32.f32 %v829_v60  ;;  %v453_v60 = vand.u32 65535, %v2093_v2 }
  0xe4   : > { %3083 = vst [vmem:[#allocation42_spill] sm:$0xff] %v2393_v20  ;;  %v448_v15 = vsel %vm416_vm14, %v1844_v1, 85  ;;  %vm415_vm0 = vcmp.eq.f32.partialorder %v2054_v38, %v2401_v10  ;;  %v449_v45 = vsel %vm417_vm15, %v1844_v1, 85  ;;  %v498_v2 = vand.u32 65535, %v2123_v14 }
  0xe5   : > { %3084 = vst [vmem:[#allocation43_spill] sm:$0xff] %v2396_v42  ;;  %v447_v22 = vsel %vm415_vm0, %v1844_v1, 85  ;;  %v2412_v36 = vsel %vm291_vm1, %v448_v15, 2147483647 }
  0xe6   : > { %3085 = vst [vmem:[#allocation44_spill] sm:$0xff] %v2401_v10  ;;  %v874_v20 = vshra.s32 %v2412_v36, 16  ;;  %v2417_v37 = vsel %vm291_vm1, %v447_v22, 2147483647  ;;  %v2427_v10 = vsel %vm291_vm1, %v449_v45, 2147483647 }
  0xe7   : > { %3086 = vst [vmem:[#allocation45_spill] sm:$0xff] %v2412_v36  ;;  %v859_v42 = vshra.s32 %v2417_v37, 16  ;;  %v889_v15 = vshra.s32 %v2427_v10, 16 }
  0xe8   : > { %3087 = vst [vmem:[#allocation46_spill] sm:$0xff] %v2417_v37  ;;  %v2420_v46 = vcvt.s32.f32 %v874_v20  ;;  %v500_v37 = vcvt.s32.f32 %v498_v2 }
  0xe9   : > { %3089 = vst [vmem:[#allocation48_spill] sm:$0xff] %v2422_v26  ;;  %v2424_v38 = vcvt.s32.f32 %v859_v42  ;;  %v2433_v22 = vcvt.s32.f32 %v889_v15  ;;  %v483_v42 = vand.u32 65535, %v2089_v62  ;;  %v528_v62 = vand.u32 65535, %v2120_v5 }
  0xea   : > { %3088 = vst [vmem:[#allocation47_spill] sm:$0xff] %v2420_v46  ;;  %877 = vmin.xlane.f32.xlu0 %v2420_v46  ;;  %v2440_v45 = vpop.xlane.xlu1 %386 }
  0xeb   : > { %3090 = vst [vmem:[#allocation49_spill] sm:$0xff] %v2424_v38  ;;  %862 = vmin.xlane.f32.xlu2 %v2424_v38  ;;  %832 = vmin.xlane.f32.xlu1 %v2422_v26  ;;  %v2436_v20 = vpop.xlane.xlu0 %383  ;;  %v485_v46 = vcvt.s32.f32 %v483_v42  ;;  %v455_v26 = vcvt.s32.f32 %v453_v60  ;;  %v530_v51 = vcvt.s32.f32 %v528_v62  ;;  %v588_v62 = vand.u32 65535, %v2201_v44 }
  0xec   : > { %3091 = vst [vmem:[#allocation50_spill] sm:$0xff] %v2427_v10  ;;  %v468_v10 = vand.u32 65535, %v2129_v27  ;;  %v573_v27 = vand.u32 65535, %v2160_v23  ;;  %v663_v44 = vand.u32 65535, %v2232_v41 }
  0xed   : > { %3092 = vst [vmem:[#allocation51_spill] sm:$0xff] %v2433_v22 }
  0xf3   : > { %892 = vmin.xlane.f32.xlu1 %v2433_v22 }
 0x115   : > { %v2442_v36 = vpop.xlane.xlu0 %487 }
 0x116   : > { %v2444_v38 = vpop.xlane.xlu2 %457  ;;  %vm489_vm2 = vcmp.eq.f32.partialorder %v2096_v6, %v2442_v36 }
 0x117   : > { %vm459_vm3 = vcmp.eq.f32.partialorder %v2098_v4, %v2444_v38  ;;  %v490_v15 = vsel %vm489_vm2, %v485_v46, inf  ;;  %v470_v46 = vcvt.s32.f32 %v468_v10 }
 0x118   : > { %v460_v22 = vsel %vm459_vm3, %v455_v26, inf  ;;  %491 = vmin.xlane.f32.xlu1 %v490_v15  ;;  %v543_v26 = vand.u32 65535, %v2165_v53  ;;  %v575_v15 = vcvt.s32.f32 %v573_v27  ;;  %v618_v53 = vand.u32 65535, %v2196_v32 }
 0x119   : > { %461 = vmin.xlane.f32.xlu0 %v460_v22  ;;  %v633_v27 = vand.u32 65535, %v2237_v0 }
 0x11d   : > { %v2453_v42 = vpop.xlane.xlu0 %532 }
 0x11e   : > { %v2455_v60 = vpop.xlane.xlu2 %502  ;;  %vm534_vm4 = vcmp.eq.f32.partialorder %v2132_v16, %v2453_v42  ;;  %v2459_v6 = vpop.xlane.xlu1 %472  ;;  %v513_v16 = vand.u32 65535, %v2139_v31 }
 0x11f   : > { %vm504_vm5 = vcmp.eq.f32.partialorder %v2134_v29, %v2455_v60  ;;  %v535_v4 = vsel %vm534_vm4, %v530_v51, inf  ;;  %vm474_vm6 = vcmp.eq.f32.partialorder %v2136_v30, %v2459_v6  ;;  %v545_v51 = vcvt.s32.f32 %v543_v26 }
 0x120   : > { %v505_v5 = vsel %vm504_vm5, %v500_v37, inf  ;;  %536 = vmin.xlane.f32.xlu1 %v535_v4  ;;  %v475_v14 = vsel %vm474_vm6, %v470_v46, inf  ;;  %v515_v23 = vcvt.s32.f32 %v513_v16  ;;  %v620_v46 = vcvt.s32.f32 %v618_v53 }
 0x121   : > { %506 = vmin.xlane.f32.xlu0 %v505_v5  ;;  %476 = vmin.xlane.f32.xlu2 %v475_v14  ;;  %v590_v4 = vcvt.s32.f32 %v588_v62  ;;  %v665_v16 = vcvt.s32.f32 %v663_v44  ;;  %v768_v44 = vand.u32 65535, %v2345_v7 }
 0x125   : > { %v2468_v22 = vpop.xlane.xlu0 %577 }
 0x126   : > { %v2470_v29 = vpop.xlane.xlu2 %547  ;;  %vm579_vm7 = vcmp.eq.f32.partialorder %v2168_v58, %v2468_v22  ;;  %v2474_v30 = vpop.xlane.xlu1 %517  ;;  %v558_v58 = vand.u32 65535, %v2175_v3 }
 0x127   : > { %vm549_vm8 = vcmp.eq.f32.partialorder %v2172_v25, %v2470_v29  ;;  %v580_v10 = vsel %vm579_vm7, %v575_v15, inf  ;;  %vm519_vm9 = vcmp.eq.f32.partialorder %v2170_v63, %v2474_v30  ;;  %v635_v15 = vcvt.s32.f32 %v633_v27 }
 0x128   : > { %v550_v37 = vsel %vm549_vm8, %v545_v51, inf  ;;  %581 = vmin.xlane.f32.xlu1 %v580_v10  ;;  %v520_v31 = vsel %vm519_vm9, %v515_v23, inf  ;;  %v560_v32 = vcvt.s32.f32 %v558_v58  ;;  %v678_v10 = vand.u32 65535, %v2273_v39 }
 0x129   : > { %551 = vmin.xlane.f32.xlu0 %v550_v37  ;;  %521 = vmin.xlane.f32.xlu2 %v520_v31 }
 0x12a   : > { %v680_v53 = vcvt.s32.f32 %v678_v10 }
 0x12d   : > { %v2483_v2 = vpop.xlane.xlu0 %622 }
 0x12e   : > { %v2485_v25 = vpop.xlane.xlu2 %592  ;;  %vm624_vm10 = vcmp.eq.f32.partialorder %v2204_v47, %v2483_v2  ;;  %v2489_v63 = vpop.xlane.xlu1 %562  ;;  %v603_v47 = vand.u32 65535, %v2211_v48  ;;  %v708_v48 = vand.u32 65535, %v2268_v50 }
 0x12f   : > { %vm594_vm11 = vcmp.eq.f32.partialorder %v2208_v34, %v2485_v25  ;;  %v625_v5 = vsel %vm624_vm10, %v620_v46, inf  ;;  %vm564_vm12 = vcmp.eq.f32.partialorder %v2206_v24, %v2489_v63  ;;  %v723_v46 = vand.u32 65535, %v2309_v54 }
 0x130   : > { %v595_v14 = vsel %vm594_vm11, %v590_v4, inf  ;;  %626 = vmin.xlane.f32.xlu1 %v625_v5  ;;  %v565_v3 = vsel %vm564_vm12, %v560_v32, inf  ;;  %v605_v41 = vcvt.s32.f32 %v603_v47  ;;  %v710_v31 = vcvt.s32.f32 %v708_v48 }
 0x131   : > { %596 = vmin.xlane.f32.xlu0 %v595_v14  ;;  %566 = vmin.xlane.f32.xlu2 %v565_v3  ;;  %v725_v5 = vcvt.s32.f32 %v723_v46  ;;  %vm419_vm10 = vcmp.eq.f32.partialorder %v2072_v49, %v2440_v45  ;;  %v3094_v49 = vld [vmem:[#allocation40_spill] sm:$0xff]  ;;  %v3098_v46 = vld [vmem:[#allocation41_spill] sm:$0xff] }
 0x135   : > { %v2498_v26 = vpop.xlane.xlu0 %667 }
 0x136   : > { %v2500_v34 = vpop.xlane.xlu2 %637  ;;  %vm669_vm13 = vcmp.eq.f32.partialorder %v2240_v17, %v2498_v26  ;;  %v2504_v24 = vpop.xlane.xlu1 %607  ;;  %v648_v17 = vand.u32 65535, %v2247_v19  ;;  %v753_v19 = vand.u32 65535, %v2304_v59 }
 0x137   : > { %vm639_vm14 = vcmp.eq.f32.partialorder %v2244_v43, %v2500_v34  ;;  %v670_v51 = vsel %vm669_vm13, %v665_v16, inf  ;;  %vm609_vm15 = vcmp.eq.f32.partialorder %v2242_v57, %v2504_v24  ;;  %v770_v16 = vcvt.s32.f32 %v768_v44 }
 0x138   : > { %v640_v23 = vsel %vm639_vm14, %v635_v15, inf  ;;  %671 = vmin.xlane.f32.xlu1 %v670_v51  ;;  %v610_v0 = vsel %vm609_vm15, %v605_v41, inf  ;;  %v650_v50 = vcvt.s32.f32 %v648_v17  ;;  %v755_v32 = vcvt.s32.f32 %v753_v19  ;;  %v3093_v51 = vld [vmem:[#allocation35_spill] sm:$0xff] }
 0x139   : > { %641 = vmin.xlane.f32.xlu0 %v640_v23  ;;  %611 = vmin.xlane.f32.xlu2 %v610_v0  ;;  %v783_v23 = vand.u32 65535, %v3093_v51 }
 0x13b   : > { %v785_v17 = vcvt.s32.f32 %v783_v23 }
 0x13d   : > { %v2513_v37 = vpop.xlane.xlu0 %712 }
 0x13e   : > { %v2515_v43 = vpop.xlane.xlu2 %682  ;;  %vm714_vm0 = vcmp.eq.f32.partialorder %v2276_v18, %v2513_v37  ;;  %v2519_v57 = vpop.xlane.xlu1 %652  ;;  %v693_v18 = vand.u32 65535, %v2283_v33  ;;  %v798_v33 = vand.u32 65535, %v2340_v9 }
 0x13f   : > { %vm684_vm2 = vcmp.eq.f32.partialorder %v2280_v52, %v2515_v43  ;;  %v715_v62 = vsel %vm714_vm0, %v710_v31, inf  ;;  %vm654_vm3 = vcmp.eq.f32.partialorder %v2278_v13, %v2519_v57 }
 0x140   : > { %v685_v58 = vsel %vm684_vm2, %v680_v53, inf  ;;  %716 = vmin.xlane.f32.xlu1 %v715_v62  ;;  %v655_v39 = vsel %vm654_vm3, %v650_v50, inf  ;;  %v695_v59 = vcvt.s32.f32 %v693_v18  ;;  %v800_v47 = vcvt.s32.f32 %v798_v33  ;;  %v3095_v53 = vld [vmem:[#allocation39_spill] sm:$0xff]  ;;  %v3096_v62 = vld [vmem:[#allocation10_spill] sm:$0xff]  ;;  %v3099_v33 = vld [vmem:[#allocation49_spill] sm:$0xff] }
 0x141   : > { %686 = vmin.xlane.f32.xlu0 %v685_v58  ;;  %656 = vmin.xlane.f32.xlu2 %v655_v39  ;;  %vm418_vm14 = vcmp.eq.f32.partialorder %v3096_v62, %v2436_v20  ;;  %v3097_v58 = vld [vmem:[#allocation46_spill] sm:$0xff]  ;;  %v828_v18 = vand.u32 65535, %v3098_v46  ;;  %vm1028_vm3 = vcmask 31744  }
 0x142   : > { %v858_v39 = vand.u32 65535, %v3097_v58 }
 0x145   : > { %v2528_v4 = vpop.xlane.xlu0 %757 }
 0x146   : > { %v2530_v52 = vpop.xlane.xlu2 %727  ;;  %vm759_vm4 = vcmp.eq.f32.partialorder %v2312_v40, %v2528_v4  ;;  %v2534_v13 = vpop.xlane.xlu1 %697  ;;  %v738_v40 = vand.u32 65535, %v2319_v28  ;;  %v843_v28 = vand.u32 65535, %v2376_v21 }
 0x147   : > { %vm729_vm5 = vcmp.eq.f32.partialorder %v2316_v61, %v2530_v52  ;;  %v760_v14 = vsel %vm759_vm4, %v755_v32, inf  ;;  %vm699_vm6 = vcmp.eq.f32.partialorder %v2314_v35, %v2534_v13  ;;  %v450_v32 = vsel %vm418_vm14, %v1844_v1, 85 }
 0x148   : > { %v730_v3 = vsel %vm729_vm5, %v725_v5, inf  ;;  %761 = vmin.xlane.f32.xlu1 %v760_v14  ;;  %v700_v54 = vsel %vm699_vm6, %v695_v59, inf  ;;  %v740_v9 = vcvt.s32.f32 %v738_v40  ;;  %v845_v48 = vcvt.s32.f32 %v843_v28  ;;  %v3100_v40 = vld [vmem:[#allocation48_spill] sm:$0xff] }
 0x149   : > { %731 = vmin.xlane.f32.xlu0 %v730_v3  ;;  %701 = vmin.xlane.f32.xlu2 %v700_v54  ;;  %v860_v59 = vcvt.s32.f32 %v858_v39  ;;  %v830_v54 = vcvt.s32.f32 %v828_v18  ;;  %v2591_v44 = vsel %vm291_vm1, %v450_v32, 2147483647  ;;  %v1557_v18 = vld [vmem:[%s1850_s11 + $0x10] sm:$0xff]  ;;  %vm1061_vm4 = vcmask 39936  }
 0x14a   : > { %v3105_v32 = vld [vmem:[#allocation12_spill] sm:$0xff]  ;;  %vm1094_vm5 = vcmask 48128  }
 0x14d   : > { %v2543_v27 = vpop.xlane.xlu0 %802 }
 0x14e   : > { %v2545_v61 = vpop.xlane.xlu2 %772  ;;  %vm804_vm7 = vcmp.eq.f32.partialorder %v2348_v12, %v2543_v27  ;;  %v2549_v35 = vpop.xlane.xlu1 %742  ;;  %v813_v12 = vand.u32 65535, %v2381_v56 }
 0x14f   : > { %vm774_vm8 = vcmp.eq.f32.partialorder %v2352_v11, %v2545_v61  ;;  %v805_v15 = vsel %vm804_vm7, %v800_v47, inf  ;;  %vm744_vm9 = vcmp.eq.f32.partialorder %v2350_v8, %v2549_v35  ;;  %v451_v11 = vsel %vm419_vm10, %v1844_v1, 85 }
 0x150   : > { %v775_v41 = vsel %vm774_vm8, %v770_v16, inf  ;;  %806 = vmin.xlane.f32.xlu1 %v805_v15  ;;  %v745_v7 = vsel %vm744_vm9, %v740_v9, inf  ;;  %v815_v8 = vcvt.s32.f32 %v813_v12  ;;  %v2574_v50 = vsel %vm291_vm1, %v451_v11, 2147483647  ;;  %v3101_v9 = vld [vmem:[#allocation50_spill] sm:$0xff]  ;;  %v3102_v12 = vld [vmem:[#allocation51_spill] sm:$0xff] }
 0x151   : > { %776 = vmin.xlane.f32.xlu0 %v775_v41  ;;  %746 = vmin.xlane.f32.xlu2 %v745_v7  ;;  %v919_v19 = vshra.s32 %v2574_v50, 16  ;;  %v904_v16 = vshra.s32 %v2591_v44, 16  ;;  %v888_v15 = vand.u32 65535, %v3101_v9  ;;  %v3103_v11 = vld [vmem:[#allocation45_spill] sm:$0xff]  ;;  %v479_v9 = vcvt.f32.s32 %v2459_v6 }
 0x152   : > { %vm1194_vm8 = vcmask 1043456  }
 0x153   : > { %v2586_v3 = vcvt.s32.f32 %v919_v19  ;;  %v2598_v41 = vcvt.s32.f32 %v904_v16  ;;  %v890_v28 = vcvt.s32.f32 %v888_v15 }
 0x155   : > { %v2561_v0 = vpop.xlane.xlu0 %847 }
 0x156   : > { %v2563_v10 = vpop.xlane.xlu2 %817  ;;  %vm849_vm11 = vcmp.eq.f32.partialorder %v2384_v55, %v2561_v0  ;;  %v2567_v21 = vpop.xlane.xlu1 %787 }
 0x157   : > { %vm819_vm12 = vcmp.eq.f32.partialorder %v3094_v49, %v2563_v10  ;;  %v850_v56 = vsel %vm849_vm11, %v845_v48, inf  ;;  %vm789_vm13 = vcmp.eq.f32.partialorder %v3095_v53, %v2567_v21  ;;  %v873_v48 = vand.u32 65535, %v3103_v11 }
 0x158   : > { %v820_v31 = vsel %vm819_vm12, %v815_v8, inf  ;;  %851 = vmin.xlane.f32.xlu1 %v850_v56  ;;  %v790_v55 = vsel %vm789_vm13, %v785_v17, inf  ;;  %v3104_v8 = vld [vmem:[#allocation47_spill] sm:$0xff]  ;;  %v494_v56 = vcvt.f32.s32 %v2442_v36  ;;  %v509_v36 = vcvt.f32.s32 %v2455_v60 }
 0x159   : > { %821 = vmin.xlane.f32.xlu0 %v820_v31  ;;  %791 = vmin.xlane.f32.xlu2 %v790_v55  ;;  %v875_v49 = vcvt.s32.f32 %v873_v48  ;;  %v464_v31 = vcvt.f32.s32 %v2444_v38 }
 0x15a   : > { %v495_v62 = vshll.u32 %v494_v56, 16 }
 0x15b   : > { %v465_v39 = vshll.u32 %v464_v31, 16  ;;  %v480_v31 = vshll.u32 %v479_v9, 16  ;;  %v524_v9 = vcvt.f32.s32 %v2474_v30 }
 0x15d   : > { %v2605_v23 = vpop.xlane.xlu0 %877 }
 0x15e   : > { %v2582_v5 = vpop.xlane.xlu2 %862  ;;  %v2584_v14 = vpop.xlane.xlu1 %832  ;;  %vm879_vm2 = vcmp.eq.f32.partialorder %v3104_v8, %v2605_v23 }
 0x15f   : > { %vm864_vm15 = vcmp.eq.f32.partialorder %v3099_v33, %v2582_v5  ;;  %vm834_vm0 = vcmp.eq.f32.partialorder %v3100_v40, %v2584_v14  ;;  %v880_v17 = vsel %vm879_vm2, %v875_v49, inf  ;;  %v1558_v33 = vld [vmem:[%s1850_s11] sm:$0xff]  ;;  %v3106_v40 = vld [vmem:[#allocation13_spill] sm:$0xff]  ;;  %v510_v49 = vshll.u32 %v509_v36, 16 }
 0x160   : > { %v865_v47 = vsel %vm864_vm15, %v860_v59, inf  ;;  %v835_v1 = vsel %vm834_vm0, %v830_v54, inf  ;;  %v998_v59 = vmul.f32 %v1557_v18, %v3105_v32  ;;  %v554_v36 = vcvt.f32.s32 %v2470_v29 }
 0x161   : > { %922 = vmin.xlane.f32.xlu0 %v2586_v3  ;;  %866 = vmin.xlane.f32.xlu1 %v865_v47  ;;  %v996_v47 = vmul.f32 %v1558_v33, %v3106_v40 }
 0x162   : > { %836 = vmin.xlane.f32.xlu2 %v835_v1  ;;  %v539_v1 = vcvt.f32.s32 %v2453_v42  ;;  %v555_v29 = vshll.u32 %v554_v36, 16  ;;  %v3112_v36 = vld [vmem:[#allocation11_spill] sm:$0xff] }
 0x163   : > { %v1029_v42 = vsel %vm1028_vm3, %v1558_v33, %v996_v47  ;;  %v1561_v47 = vld [vmem:[%s1850_s11 + $0x8] sm:$0xff] }
 0x164   : > { %v540_v11 = vshll.u32 %v539_v1, 16  ;;  %v3109_v1 = vld [vmem:[#allocation16_spill] sm:$0xff] }
 0x166   : > { %v2600_v7 = vpop.xlane.xlu1 %892 }
 0x167   : > { %vm894_vm1 = vcmp.eq.f32.partialorder %v3102_v12, %v2600_v7 }
 0x168   : > { %v895_v51 = vsel %vm894_vm1, %v890_v28, inf }
 0x169   : > { %896 = vmin.xlane.f32.xlu0 %v895_v51  ;;  %v1031_v51 = vsel %vm1028_vm3, %v1557_v18, %v998_v59  ;;  %v3108_v18 = vld [vmem:[#allocation15_spill] sm:$0xff] }
 0x16a   : > { %907 = vmin.xlane.f32.xlu2 %v2598_v41 }
 0x172   : > { %881 = vmin.xlane.f32.xlu2 %v880_v17 }
 0x18b   : > { %v492_v53 = vpop.xlane.xlu1 %491 }
 0x18c   : > { %v493_v55 = vcvt.f32.s32 %v492_v53  ;;  %v462_v58 = vpop.xlane.xlu0 %461 }
 0x18d   : > { %v463_v19 = vcvt.f32.s32 %v462_v58  ;;  %v1559_v58 = vld [vmem:[%s1850_s11 + $0x28] sm:$0xff] }
 0x18e   : > { %v496_v46 = vadd.s32 %v495_v62, %v493_v55 }
 0x18f   : > { %v466_v54 = vadd.s32 %v465_v39, %v463_v19  ;;  %v3107_v39 = vld [vmem:[#allocation14_spill] sm:$0xff] }
 0x190   : > { %v1434_v16 = vadd.s32 4294967291, %v496_v46  ;;  %v1001_v19 = vmul.f32 %v1559_v58, %v3107_v39  ;;  %v1560_v46 = vld [vmem:[%s1850_s11 + $0x18] sm:$0xff]  ;;  %v1562_v39 = vld [vmem:[%s1850_s11 + $0x40] sm:$0xff] }
 0x191   : > { %v1432_v38 = vadd.s32 4294967291, %v466_v54  ;;  %v999_v32 = vmul.f32 %v1560_v46, %v3108_v18  ;;  %v584_v54 = vcvt.f32.s32 %v2468_v22  ;;  %v1563_v18 = vld [vmem:[%s1850_s11 + $0x30] sm:$0xff] }
 0x192   : > { %v966_v15 = vcvt.s32.f32 %v1434_v16  ;;  %v997_v16 = vmul.f32 %v1561_v47, %v3109_v1 }
 0x193   : > { %v964_v28 = vcvt.s32.f32 %v1432_v38  ;;  %v537_v12 = vpop.xlane.xlu1 %536  ;;  %v585_v22 = vshll.u32 %v584_v54, 16 }
 0x194   : > { %v538_v48 = vcvt.f32.s32 %v537_v12  ;;  %v507_v8 = vpop.xlane.xlu0 %506  ;;  %v2622_v60 = vsel %vm1061_vm4, %v1031_v51, %v966_v15  ;;  %v477_v17 = vpop.xlane.xlu2 %476 }
 0x195   : > { %v508_v6 = vcvt.f32.s32 %v507_v8  ;;  %v1062_v56 = vsel %vm1061_vm4, %v1029_v42, %v964_v28  ;;  %v478_v53 = vcvt.f32.s32 %v477_v17 }
 0x196   : > { %v541_v62 = vadd.s32 %v540_v11, %v538_v48  ;;  %v1095_v55 = vsel %vm1094_vm5, %v1062_v56, 0.0  ;;  %v1032_v11 = vsel %vm1028_vm3, %v1560_v46, %v999_v32  ;;  %v1034_v48 = vsel %vm1028_vm3, %v1559_v58, %v1001_v19  ;;  %v3110_v19 = vld [vmem:[#allocation17_spill] sm:$0xff]  ;;  %v3111_v32 = vld [vmem:[#allocation19_spill] sm:$0xff] }
 0x197   : > { %v511_v59 = vadd.s32 %v510_v49, %v508_v6  ;;  %1127 = vxpose.xlu0.b32.start [1/16] (narrow) %v1095_v55, 8  ;;  %v481_v33 = vadd.s32 %v480_v31, %v478_v53  ;;  %v1030_v56 = vsel %vm1028_vm3, %v1561_v47, %v997_v16  ;;  %v525_v53 = vshll.u32 %v524_v9, 16  ;;  %v1564_v16 = vld [vmem:[%s1850_s11 + $0x20] sm:$0xff] }
 0x198   : > { %v1437_v40 = vadd.s32 4294967291, %v541_v62  ;;  %v1004_v46 = vmul.f32 %v1562_v39, %v3110_v19  ;;  %v599_v9 = vcvt.f32.s32 %v2485_v25  ;;  %v1565_v19 = vld [vmem:[%s1850_s11 + $0x58] sm:$0xff] }
 0x199   : > { %v1435_v38 = vadd.s32 4294967291, %v511_v59  ;;  %v1433_v15 = vadd.s32 4294967291, %v481_v33  ;;  %v1002_v59 = vmul.f32 %v1563_v18, %v3111_v32  ;;  %v1566_v32 = vld [vmem:[%s1850_s11 + $0x48] sm:$0xff] }
 0x19a   : > { %v969_v28 = vcvt.s32.f32 %v1437_v40  ;;  %v629_v40 = vcvt.f32.s32 %v2483_v2  ;;  %v1037_v2 = vsel %vm1028_vm3, %v1562_v39, %v1004_v46  ;;  %v600_v25 = vshll.u32 %v599_v9, 16  ;;  %v3113_v46 = vld [vmem:[#allocation20_spill] sm:$0xff] }
 0x19b   : > { %v967_v12 = vcvt.s32.f32 %v1435_v38  ;;  %v582_v51 = vpop.xlane.xlu1 %581  ;;  %v965_v8 = vcvt.s32.f32 %v1433_v15  ;;  %v1000_v38 = vmul.f32 %v1564_v16, %v3112_v36  ;;  %v1567_v36 = vld [vmem:[%s1850_s11 + $0x38] sm:$0xff] }
 0x19c   : > { %v583_v42 = vcvt.f32.s32 %v582_v51  ;;  %v552_v49 = vpop.xlane.xlu0 %551  ;;  %v2638_v17 = vsel %vm1061_vm4, %v1034_v48, %v969_v28  ;;  %v522_v6 = vpop.xlane.xlu2 %521  ;;  %v569_v28 = vcvt.f32.s32 %v2489_v63 }
 0x19d   : > { %v553_v30 = vcvt.f32.s32 %v552_v49  ;;  %v2642_v31 = vsel %vm1061_vm4, %v1032_v11, %v967_v12  ;;  %v523_v62 = vcvt.f32.s32 %v522_v6  ;;  %v1063_v58 = vsel %vm1061_vm4, %v1030_v56, %v965_v8 }
 0x19e   : > { %v586_v55 = vadd.s32 %v585_v22, %v583_v42  ;;  %v1096_v33 = vsel %vm1094_vm5, %v1063_v58, 0.0  ;;  %v1035_v22 = vsel %vm1028_vm3, %v1563_v18, %v1002_v59  ;;  %v630_v8 = vshll.u32 %v629_v40, 16  ;;  %v3114_v59 = vld [vmem:[#allocation22_spill] sm:$0xff] }
 0x19f   : > { %v556_v54 = vadd.s32 %v555_v29, %v553_v30  ;;  %v526_v47 = vadd.s32 %v525_v53, %v523_v62  ;;  %1128 = vxpose.xlu0.b32.cont [2/16] (narrow) %v1096_v33, 8  ;;  %v1033_v56 = vsel %vm1028_vm3, %v1564_v16, %v1000_v38  ;;  %v570_v62 = vshll.u32 %v569_v28, 16  ;;  %v3115_v38 = vld [vmem:[#allocation18_spill] sm:$0xff] }
 0x1a0   : > { %v1440_v1 = vadd.s32 4294967291, %v586_v55  ;;  %v1007_v18 = vmul.f32 %v1565_v19, %v3113_v46  ;;  %v1097_v40 = vsel %vm1094_vm5, %v2622_v60, 0.0  ;;  %v1003_v9 = vmul.f32 %v1567_v36, %v3115_v38  ;;  %v3116_v46 = vld [vmem:[#allocation23_spill] sm:$0xff]  ;;  %v3118_v38 = vld [vmem:[#allocation21_spill] sm:$0xff] }
 0x1a1   : > { %v1438_v15 = vadd.s32 4294967291, %v556_v54  ;;  %v1436_v12 = vadd.s32 4294967291, %v526_v47  ;;  %v1005_v54 = vmul.f32 %v1566_v32, %v3114_v59  ;;  %v674_v47 = vcvt.f32.s32 %v2498_v26  ;;  %v3117_v59 = vld [vmem:[#allocation25_spill] sm:$0xff] }
 0x1a2   : > { %v972_v51 = vcvt.s32.f32 %v1440_v1  ;;  %v1040_v26 = vsel %vm1028_vm3, %v1565_v19, %v1007_v18  ;;  %v1568_v19 = vld [vmem:[%s1850_s11 + $0x70] sm:$0xff] }
 0x1a3   : > { %v970_v11 = vcvt.s32.f32 %v1438_v15  ;;  %v627_v48 = vpop.xlane.xlu1 %626  ;;  %v968_v42 = vcvt.s32.f32 %v1436_v12  ;;  %v644_v15 = vcvt.f32.s32 %v2500_v34  ;;  %v614_v12 = vcvt.f32.s32 %v2504_v24 }
 0x1a4   : > { %v628_v49 = vcvt.f32.s32 %v627_v48  ;;  %v597_v29 = vpop.xlane.xlu0 %596  ;;  %v2658_v6 = vsel %vm1061_vm4, %v1037_v2, %v972_v51  ;;  %v567_v30 = vpop.xlane.xlu2 %566  ;;  %v1038_v2 = vsel %vm1028_vm3, %v1566_v32, %v1005_v54  ;;  %v675_v60 = vshll.u32 %v674_v47, 16  ;;  %v1569_v32 = vld [vmem:[%s1850_s11 + $0x60] sm:$0xff] }
 0x1a5   : > { %v598_v63 = vcvt.f32.s32 %v597_v29  ;;  %v2662_v53 = vsel %vm1061_vm4, %v1035_v22, %v970_v11  ;;  %v568_v55 = vcvt.f32.s32 %v567_v30  ;;  %v2665_v39 = vsel %vm1061_vm4, %v1033_v56, %v968_v42 }
 0x1a6   : > { %v631_v58 = vadd.s32 %v630_v8, %v628_v49  ;;  %v645_v34 = vshll.u32 %v644_v15, 16  ;;  %v1036_v30 = vsel %vm1028_vm3, %v1567_v36, %v1003_v9  ;;  %v615_v56 = vshll.u32 %v614_v12, 16  ;;  %v1570_v36 = vld [vmem:[%s1850_s11 + $0x50] sm:$0xff] }
 0x1a7   : > { %v601_v33 = vadd.s32 %v600_v25, %v598_v63  ;;  %v571_v1 = vadd.s32 %v570_v62, %v568_v55  ;;  %1129 = vxpose.xlu0.b32.cont [3/16] (narrow) %v1097_v40, 8  ;;  %v1010_v18 = vmul.f32 %v1568_v19, %v3116_v46  ;;  %v1008_v54 = vmul.f32 %v1569_v32, %v3117_v59 }
 0x1a8   : > { %v1443_v16 = vadd.s32 4294967291, %v631_v58  ;;  %v1098_v40 = vsel %vm1094_vm5, %v2642_v31, 0.0  ;;  %v719_v47 = vcvt.f32.s32 %v2513_v37  ;;  %v1006_v9 = vmul.f32 %v1570_v36, %v3118_v38 }
 0x1a9   : > { %v1441_v28 = vadd.s32 4294967291, %v601_v33  ;;  %v1439_v51 = vadd.s32 4294967291, %v571_v1  ;;  %v689_v15 = vcvt.f32.s32 %v2515_v43  ;;  %v659_v12 = vcvt.f32.s32 %v2519_v57 }
 0x1aa   : > { %v975_v11 = vcvt.s32.f32 %v1443_v16  ;;  %v1043_v37 = vsel %vm1028_vm3, %v1568_v19, %v1010_v18  ;;  %v720_v31 = vshll.u32 %v719_v47, 16  ;;  %v3119_v19 = vld [vmem:[#allocation26_spill] sm:$0xff]  ;;  %v1572_v18 = vld [vmem:[%s1850_s11 + $0x78] sm:$0xff] }
 0x1ab   : > { %v973_v48 = vcvt.s32.f32 %v1441_v28  ;;  %v672_v22 = vpop.xlane.xlu1 %671  ;;  %v971_v8 = vcvt.s32.f32 %v1439_v51  ;;  %v690_v43 = vshll.u32 %v689_v15, 16 }
 0x1ac   : > { %v673_v42 = vcvt.f32.s32 %v672_v22  ;;  %v642_v49 = vpop.xlane.xlu0 %641  ;;  %v2681_v29 = vsel %vm1061_vm4, %v1040_v26, %v975_v11  ;;  %v612_v25 = vpop.xlane.xlu2 %611 }
 0x1ad   : > { %v643_v24 = vcvt.f32.s32 %v642_v49  ;;  %v2685_v63 = vsel %vm1061_vm4, %v1038_v2, %v973_v48  ;;  %v613_v62 = vcvt.f32.s32 %v612_v25  ;;  %v2688_v58 = vsel %vm1061_vm4, %v1036_v30, %v971_v8 }
 0x1ae   : > { %v676_v55 = vadd.s32 %v675_v60, %v673_v42  ;;  %v1041_v2 = vsel %vm1028_vm3, %v1569_v32, %v1008_v54  ;;  %v3120_v32 = vld [vmem:[#allocation28_spill] sm:$0xff] }
 0x1af   : > { %v646_v33 = vadd.s32 %v645_v34, %v643_v24  ;;  %v616_v1 = vadd.s32 %v615_v56, %v613_v62  ;;  %1130 = vxpose.xlu0.b32.cont [4/16] (narrow) %v1098_v40, 8  ;;  %v1039_v34 = vsel %vm1028_vm3, %v1570_v36, %v1006_v9  ;;  %v660_v24 = vshll.u32 %v659_v12, 16  ;;  %v3121_v36 = vld [vmem:[#allocation24_spill] sm:$0xff] }
 0x1b0   : > { %v1446_v16 = vadd.s32 4294967291, %v676_v55  ;;  %v1571_v55 = vld [vmem:[%s1850_s11 + $0x88] sm:$0xff]  ;;  %v1011_v59 = vmul.f32 %v1572_v18, %v3120_v32  ;;  %v764_v40 = vcvt.f32.s32 %v2528_v4  ;;  %v734_v9 = vcvt.f32.s32 %v2530_v52 }
 0x1b1   : > { %v1444_v28 = vadd.s32 4294967291, %v646_v33  ;;  %v1442_v51 = vadd.s32 4294967291, %v616_v1  ;;  %v1013_v46 = vmul.f32 %v1571_v55, %v3119_v19  ;;  %v1099_v33 = vsel %vm1094_vm5, %v2665_v39, 0.0  ;;  %v1575_v19 = vld [vmem:[%s1850_s11 + $0x90] sm:$0xff] }
 0x1b2   : > { %v978_v11 = vcvt.s32.f32 %v1446_v16  ;;  %v1573_v16 = vld [vmem:[%s1850_s11 + $0x68] sm:$0xff]  ;;  %v765_v39 = vshll.u32 %v764_v40, 16  ;;  %v735_v52 = vshll.u32 %v734_v9, 16  ;;  %v749_v9 = vcvt.f32.s32 %v2549_v35 }
 0x1b3   : > { %v976_v48 = vcvt.s32.f32 %v1444_v28  ;;  %v717_v22 = vpop.xlane.xlu1 %716  ;;  %v974_v26 = vcvt.s32.f32 %v1442_v51  ;;  %v1009_v38 = vmul.f32 %v1573_v16, %v3121_v36  ;;  %v704_v28 = vcvt.f32.s32 %v2534_v13 }
 0x1b4   : > { %v718_v60 = vcvt.f32.s32 %v717_v22  ;;  %v687_v8 = vpop.xlane.xlu0 %686  ;;  %v2704_v42 = vsel %vm1061_vm4, %v1043_v37, %v978_v11  ;;  %v657_v49 = vpop.xlane.xlu2 %656  ;;  %v1044_v22 = vsel %vm1028_vm3, %v1572_v18, %v1011_v59  ;;  %v1046_v4 = vsel %vm1028_vm3, %v1571_v55, %v1013_v46  ;;  %v3123_v46 = vld [vmem:[#allocation31_spill] sm:$0xff] }
 0x1b5   : > { %v688_v57 = vcvt.f32.s32 %v687_v8  ;;  %v2708_v25 = vsel %vm1061_vm4, %v1041_v2, %v976_v48  ;;  %v658_v30 = vcvt.f32.s32 %v657_v49  ;;  %v2711_v62 = vsel %vm1061_vm4, %v1039_v34, %v974_v26 }
 0x1b6   : > { %v721_v56 = vadd.s32 %v720_v31, %v718_v60  ;;  %v1042_v8 = vsel %vm1028_vm3, %v1573_v16, %v1009_v38  ;;  %v705_v49 = vshll.u32 %v704_v28, 16  ;;  %v1014_v18 = vmul.f32 %v1575_v19, %v3123_v46 }
 0x1b7   : > { %v691_v54 = vadd.s32 %v690_v43, %v688_v57  ;;  %v661_v47 = vadd.s32 %v660_v24, %v658_v30  ;;  %1131 = vxpose.xlu0.b32.cont [5/16] (narrow) %v1099_v33, 8  ;;  %v1574_v30 = vld [vmem:[%s1850_s11 + $0xa0] sm:$0xff]  ;;  %v1100_v59 = vsel %vm1094_vm5, %v2638_v17, 0.0  ;;  %v779_v36 = vcvt.f32.s32 %v2545_v61 }
 0x1b8   : > { %v1449_v1 = vadd.s32 4294967291, %v721_v56  ;;  %v3122_v56 = vld [vmem:[#allocation29_spill] sm:$0xff]  ;;  %v1101_v46 = vsel %vm1094_vm5, %v2662_v53, 0.0 }
 0x1b9   : > { %v1447_v15 = vadd.s32 4294967291, %v691_v54  ;;  %v1445_v12 = vadd.s32 4294967291, %v661_v47  ;;  %v1016_v55 = vmul.f32 %v1574_v30, %v3122_v56  ;;  %v809_v54 = vcvt.f32.s32 %v2543_v27  ;;  %v1576_v47 = vld [vmem:[%s1850_s11 + $0x80] sm:$0xff] }
 0x1ba   : > { %v981_v51 = vcvt.s32.f32 %v1449_v1  ;;  %v3124_v1 = vld [vmem:[#allocation27_spill] sm:$0xff]  ;;  %v780_v61 = vshll.u32 %v779_v36, 16  ;;  %v3126_v56 = vld [vmem:[#allocation34_spill] sm:$0xff] }
 0x1bb   : > { %v979_v11 = vcvt.s32.f32 %v1447_v15  ;;  %v762_v48 = vpop.xlane.xlu1 %761  ;;  %v977_v2 = vcvt.s32.f32 %v1445_v12  ;;  %v1012_v16 = vmul.f32 %v1576_v47, %v3124_v1  ;;  %v1049_v27 = vsel %vm1028_vm3, %v1574_v30, %v1016_v55  ;;  %v1578_v30 = vld [vmem:[%s1850_s11 + $0xa8] sm:$0xff] }
 0x1bc   : > { %v763_v37 = vcvt.f32.s32 %v762_v48  ;;  %v732_v31 = vpop.xlane.xlu0 %731  ;;  %v2727_v26 = vsel %vm1061_vm4, %v1046_v4, %v981_v51  ;;  %v702_v60 = vpop.xlane.xlu2 %701  ;;  %v810_v17 = vshll.u32 %v809_v54, 16  ;;  %v1017_v55 = vmul.f32 %v1578_v30, %v3126_v56  ;;  %v1579_v54 = vld [vmem:[%s1850_s11 + $0x98] sm:$0xff]  ;;  %v1582_v56 = vld [vmem:[%s1850_s11 + $0xc0] sm:$0xff] }
 0x1bd   : > { %v733_v13 = vcvt.f32.s32 %v732_v31  ;;  %v2731_v43 = vsel %vm1061_vm4, %v1044_v22, %v979_v11  ;;  %v703_v57 = vcvt.f32.s32 %v702_v60  ;;  %v2734_v24 = vsel %vm1061_vm4, %v1042_v8, %v977_v2 }
 0x1be   : > { %v766_v34 = vadd.s32 %v765_v39, %v763_v37  ;;  %v1047_v11 = vsel %vm1028_vm3, %v1575_v19, %v1014_v18  ;;  %v1045_v37 = vsel %vm1028_vm3, %v1576_v47, %v1012_v16  ;;  %v854_v18 = vcvt.f32.s32 %v2561_v0 }
 0x1bf   : > { %v736_v32 = vadd.s32 %v735_v52, %v733_v13  ;;  %v706_v33 = vadd.s32 %v705_v49, %v703_v57  ;;  %1132 = vxpose.xlu0.b32.cont [6/16] (narrow) %v1100_v59, 8  ;;  %v750_v52 = vshll.u32 %v749_v9, 16  ;;  %v1577_v49 = vld [vmem:[%s1850_s11 + $0xb8] sm:$0xff]  ;;  %v3125_v57 = vld [vmem:[#allocation32_spill] sm:$0xff]  ;;  %v824_v47 = vcvt.f32.s32 %v2563_v10 }
 0x1c0   : > { %v1452_v40 = vadd.s32 4294967291, %v766_v34  ;;  %v1019_v34 = vmul.f32 %v1577_v49, %v3125_v57  ;;  %v794_v16 = vcvt.f32.s32 %v2567_v21  ;;  %v855_v53 = vshll.u32 %v854_v18, 16 }
 0x1c1   : > { %v1450_v38 = vadd.s32 4294967291, %v736_v32  ;;  %v1448_v15 = vadd.s32 4294967291, %v706_v33  ;;  %v3127_v33 = vld [vmem:[#allocation30_spill] sm:$0xff]  ;;  %v825_v10 = vshll.u32 %v824_v47, 16 }
 0x1c2   : > { %v984_v28 = vcvt.s32.f32 %v1452_v40  ;;  %v1015_v40 = vmul.f32 %v1579_v54, %v3127_v33  ;;  %v1052_v0 = vsel %vm1028_vm3, %v1577_v49, %v1019_v34  ;;  %v3129_v49 = vld [vmem:[#allocation36_spill] sm:$0xff]  ;;  %v839_v33 = vcvt.f32.s32 %v2584_v14 }
 0x1c3   : > { %v982_v12 = vcvt.s32.f32 %v1450_v38  ;;  %v807_v51 = vpop.xlane.xlu1 %806  ;;  %v980_v48 = vcvt.s32.f32 %v1448_v15 }
 0x1c4   : > { %v808_v22 = vcvt.f32.s32 %v807_v51  ;;  %v777_v4 = vpop.xlane.xlu0 %776  ;;  %v2750_v39 = vsel %vm1061_vm4, %v1049_v27, %v984_v28  ;;  %v747_v2 = vpop.xlane.xlu2 %746  ;;  %v1050_v28 = vsel %vm1028_vm3, %v1578_v30, %v1017_v55  ;;  %v1102_v30 = vsel %vm1094_vm5, %v2688_v58, 0.0  ;;  %v3130_v55 = vld [vmem:[#allocation38_spill] sm:$0xff] }
 0x1c5   : > { %v778_v35 = vcvt.f32.s32 %v777_v4  ;;  %v2754_v31 = vsel %vm1061_vm4, %v1047_v11, %v982_v12  ;;  %v748_v60 = vcvt.f32.s32 %v747_v2  ;;  %v2757_v8 = vsel %vm1061_vm4, %v1045_v37, %v980_v48  ;;  %v1580_v37 = vld [vmem:[%s1850_s11 + $0xb0] sm:$0xff] }
 0x1c6   : > { %v811_v13 = vadd.s32 %v810_v17, %v808_v22  ;;  %v1048_v48 = vsel %vm1028_vm3, %v1579_v54, %v1015_v40  ;;  %v795_v4 = vshll.u32 %v794_v16, 16 }
 0x1c7   : > { %v781_v19 = vadd.s32 %v780_v61, %v778_v35  ;;  %v751_v32 = vadd.s32 %v750_v52, %v748_v60  ;;  %1133 = vxpose.xlu0.b32.cont [7/16] (narrow) %v1101_v46, 8  ;;  %v3128_v52 = vld [vmem:[#allocation33_spill] sm:$0xff] }
 0x1c8   : > { %v1455_v59 = vadd.s32 4294967291, %v811_v13  ;;  %v1018_v60 = vmul.f32 %v1580_v37, %v3128_v52  ;;  %v1581_v13 = vld [vmem:[%s1850_s11 + $0xd0] sm:$0xff] }
 0x1c9   : > { %v1453_v1 = vadd.s32 4294967291, %v781_v19  ;;  %v1451_v36 = vadd.s32 4294967291, %v751_v32  ;;  %v1022_v57 = vmul.f32 %v1581_v13, %v3129_v49  ;;  %v1020_v19 = vmul.f32 %v1582_v56, %v3130_v55 }
 0x1ca   : > { %v987_v38 = vcvt.s32.f32 %v1455_v59  ;;  %v918_v32 = vand.u32 65535, %v2574_v50  ;;  %v869_v59 = vcvt.f32.s32 %v2582_v5  ;;  %v1051_v16 = vsel %vm1028_vm3, %v1580_v37, %v1018_v60  ;;  %v3132_v37 = vld [vmem:[#allocation37_spill] sm:$0xff] }
 0x1cb   : > { %v985_v9 = vcvt.s32.f32 %v1453_v1  ;;  %v852_v15 = vpop.xlane.xlu1 %851  ;;  %v983_v12 = vcvt.s32.f32 %v1451_v36  ;;  %v1055_v58 = vsel %vm1028_vm3, %v1581_v13, %v1022_v57  ;;  %v1053_v50 = vsel %vm1028_vm3, %v1582_v56, %v1020_v19 }
 0x1cc   : > { %v853_v51 = vcvt.f32.s32 %v852_v15  ;;  %v822_v11 = vpop.xlane.xlu0 %821  ;;  %v2773_v27 = vsel %vm1061_vm4, %v1052_v0, %v987_v38  ;;  %v792_v21 = vpop.xlane.xlu2 %791  ;;  %v920_v15 = vcvt.s32.f32 %v918_v32  ;;  %v903_v13 = vand.u32 65535, %v2591_v44 }
 0x1cd   : > { %v823_v17 = vcvt.f32.s32 %v822_v11  ;;  %v2777_v22 = vsel %vm1061_vm4, %v1050_v28, %v985_v9  ;;  %v793_v61 = vcvt.f32.s32 %v792_v21  ;;  %v2780_v35 = vsel %vm1061_vm4, %v1048_v48, %v983_v12  ;;  %v1583_v48 = vld [vmem:[%s1850_s11 + $0xd8] sm:$0xff] }
 0x1ce   : > { %v856_v2 = vadd.s32 %v855_v53, %v853_v51  ;;  %v870_v28 = vshll.u32 %v869_v59, 16  ;;  %v840_v12 = vshll.u32 %v839_v33, 16  ;;  %v899_v49 = vcvt.f32.s32 %v2600_v7 }
 0x1cf   : > { %v826_v34 = vadd.s32 %v825_v10, %v823_v17  ;;  %v796_v46 = vadd.s32 %v795_v4, %v793_v61  ;;  %1134 = vxpose.xlu0.b32.cont [8/16] (narrow) %v1102_v30, 8  ;;  %v1103_v17 = vsel %vm1094_vm5, %v2658_v6, 0.0  ;;  %v3131_v4 = vld [vmem:[#allocation44_spill] sm:$0xff]  ;;  %v905_v19 = vcvt.s32.f32 %v903_v13 }
 0x1d0   : > { %v1458_v18 = vadd.s32 4294967291, %v856_v2  ;;  %v1023_v61 = vmul.f32 %v1583_v48, %v3131_v4  ;;  %v900_v32 = vshll.u32 %v899_v49, 16  ;;  %v1107_v4 = vsel %vm1094_vm5, %v2708_v25, 0.0 }
 0x1d1   : > { %v1456_v54 = vadd.s32 4294967291, %v826_v34  ;;  %v1454_v40 = vadd.s32 4294967291, %v796_v46  ;;  %v1112_v25 = vsel %vm1094_vm5, %v2727_v26, 0.0 }
 0x1d2   : > { %v990_v47 = vcvt.s32.f32 %v1458_v18  ;;  %v1056_v6 = vsel %vm1028_vm3, %v1583_v48, %v1023_v61  ;;  %v1106_v48 = vsel %vm1094_vm5, %v2681_v29, 0.0  ;;  %v1109_v61 = vsel %vm1094_vm5, %v2704_v42, 0.0 }
 0x1d3   : > { %v988_v1 = vcvt.s32.f32 %v1456_v54  ;;  %v986_v36 = vcvt.s32.f32 %v1454_v40  ;;  %v1104_v54 = vsel %vm1094_vm5, %v2685_v63, 0.0  ;;  %v1585_v40 = vld [vmem:[%s1850_s11 + $0xe8] sm:$0xff]  ;;  %v1105_v63 = vsel %vm1094_vm5, %v2711_v62, 0.0 }
 0x1d4   : > { %v867_v38 = vpop.xlane.xlu1 %866  ;;  %v2795_v9 = vpop.xlane.xlu0 %922  ;;  %v2799_v5 = vsel %vm1061_vm4, %v1055_v58, %v990_v47  ;;  %v3133_v47 = vld [vmem:[#allocation43_spill] sm:$0xff]  ;;  %v1108_v62 = vsel %vm1094_vm5, %v2734_v24, 0.0  ;;  %v1111_v29 = vsel %vm1094_vm5, %v2757_v8, 0.0  ;;  %v1113_v24 = vsel %vm1094_vm5, %v2754_v31, 0.0 }
 0x1d5   : > { %v837_v14 = vpop.xlane.xlu2 %836  ;;  %v868_v0 = vcvt.f32.s32 %v867_v38  ;;  %vm924_vm6 = vcmp.eq.f32.partialorder %v2586_v3, %v2795_v9  ;;  %v2804_v53 = vsel %vm1061_vm4, %v1053_v50, %v988_v1  ;;  %v2807_v10 = vsel %vm1061_vm4, %v1051_v16, %v986_v36  ;;  %v1584_v3 = vld [vmem:[%s1850_s11 + $0xc8] sm:$0xff] }
 0x1d6   : > { %v838_v51 = vcvt.f32.s32 %v837_v14  ;;  %v925_v11 = vsel %vm924_vm6, %v920_v15, inf  ;;  %v1021_v52 = vmul.f32 %v1584_v3, %v3132_v37  ;;  %v1025_v1 = vmul.f32 %v1585_v40, %v3133_v47 }
 0x1d7   : > { %v871_v21 = vadd.s32 %v870_v28, %v868_v0  ;;  %926 = vmin.xlane.f32.xlu2 %v925_v11  ;;  %1135 = vxpose.xlu0.b32.cont [9/16] (narrow) %v1103_v17, 8  ;;  %v884_v16 = vcvt.f32.s32 %v2605_v23  ;;  %v1586_v0 = vld [vmem:[%s1850_s11 + $0xe0] sm:$0xff]  ;;  %v1114_v42 = vsel %vm1094_vm5, %v2780_v35, 0.0  ;;  %v1116_v8 = vsel %vm1094_vm5, %v2777_v22, 0.0 }
 0x1d8   : > { %v841_v2 = vadd.s32 %v840_v12, %v838_v51  ;;  %v1054_v46 = vsel %vm1028_vm3, %v1584_v3, %v1021_v52  ;;  %v3134_v12 = vld [vmem:[#allocation42_spill] sm:$0xff]  ;;  %v929_v26 = vcvt.f32.s32 %v2795_v9  ;;  %v1117_v3 = vsel %vm1094_vm5, %v2807_v10, 0.0 }
 0x1d9   : > { %v1459_v60 = vadd.s32 4294967291, %v871_v21  ;;  %v885_v15 = vshll.u32 %v884_v16, 16  ;;  %v1024_v51 = vmul.f32 %v1586_v0, %v3134_v12  ;;  %v1118_v22 = vsel %vm1094_vm5, %v2773_v27, 0.0 }
 0x1da   : > { %v1457_v57 = vadd.s32 4294967291, %v841_v2  ;;  %v1110_v2 = vsel %vm1094_vm5, %v2731_v43, 0.0  ;;  %v1115_v43 = vsel %vm1094_vm5, %v2750_v39, 0.0  ;;  %v930_v37 = vshll.u32 %v929_v26, 16 }
 0x1db   : > { %v991_v34 = vcvt.s32.f32 %v1459_v60  ;;  %v1057_v21 = vsel %vm1028_vm3, %v1586_v0, %v1024_v51  ;;  %v1587_v60 = vld [vmem:[%s1850_s11 + $0xf8] sm:$0xff] }
 0x1dc   : > { %v989_v30 = vcvt.s32.f32 %v1457_v57  ;;  %v897_v55 = vpop.xlane.xlu0 %896  ;;  %v1027_v13 = vmul.f32 %v1587_v60, %v2440_v45 }
 0x1dd   : > { %v2818_v56 = vpop.xlane.xlu2 %907  ;;  %v2822_v18 = vsel %vm1061_vm4, %v1056_v6, %v991_v34  ;;  %v898_v59 = vcvt.f32.s32 %v897_v55 }
 0x1de   : > { %vm909_vm7 = vcmp.eq.f32.partialorder %v2598_v41, %v2818_v56  ;;  %v2827_v44 = vsel %vm1061_vm4, %v1054_v46, %v989_v30  ;;  %v1058_v41 = vsel %vm1028_vm3, %v1585_v40, %v1025_v1  ;;  %v914_v49 = vcvt.f32.s32 %v2818_v56 }
 0x1df   : > { %v910_v7 = vsel %vm909_vm7, %v905_v19, inf  ;;  %v901_v33 = vadd.s32 %v900_v32, %v898_v59  ;;  %1136 = vxpose.xlu0.b32.cont [10/16] (narrow) %v1104_v54, 8  ;;  %v1060_v9 = vsel %vm1028_vm3, %v1587_v60, %v1027_v13  ;;  %v1588_v19 = vld [vmem:[%s1850_s11 + $0xf0] sm:$0xff]  ;;  %v1119_v56 = vsel %vm1094_vm5, %v2804_v53, 0.0 }
 0x1e0   : > { %911 = vmin.xlane.f32.xlu1 %v910_v7  ;;  %v915_v30 = vshll.u32 %v914_v49, 16  ;;  %v1026_v46 = vmul.f32 %v1588_v19, %v2436_v20  ;;  %v1120_v7 = vsel %vm1094_vm5, %v2827_v44, 0.0  ;;  %v1121_v54 = vsel %vm1094_vm5, %v2799_v5, 0.0 }
 0x1e1   : > { %v1461_v58 = vadd.s32 4294967291, %v901_v33  ;;  %v1122_v20 = vsel %vm1094_vm5, %v2822_v18, 0.0 }
 0x1e2   : > { %v1059_v27 = vsel %vm1028_vm3, %v1588_v19, %v1026_v46 }
 0x1e3   : > { %v993_v36 = vcvt.s32.f32 %v1461_v58 }
 0x1e5   : > { %v882_v38 = vpop.xlane.xlu2 %881  ;;  %v2836_v28 = vsel %vm1061_vm4, %v1058_v41, %v993_v36 }
 0x1e6   : > { %v883_v50 = vcvt.f32.s32 %v882_v38  ;;  %v1124_v33 = vsel %vm1094_vm5, %v2836_v28, 0.0 }
 0x1e7   : > { %1137 = vxpose.xlu0.b32.cont [11/16] (narrow) %v1105_v63, 8 }
 0x1e8   : > { %v886_v14 = vadd.s32 %v885_v15, %v883_v50 }
 0x1ea   : > { %v1460_v11 = vadd.s32 4294967291, %v886_v14 }
 0x1ec   : > { %v992_v23 = vcvt.s32.f32 %v1460_v11 }
 0x1ee   : > { %v1090_v17 = vsel %vm1061_vm4, %v1057_v21, %v992_v23 }
 0x1ef   : > { %1138 = vxpose.xlu0.b32.cont [12/16] (narrow) %v1106_v48, 8  ;;  %v1123_v53 = vsel %vm1094_vm5, %v1090_v17, 0.0 }
 0x1f7   : > { %1139 = vxpose.xlu0.b32.cont [13/16] (narrow) %v1107_v4, 8 }
 0x1ff   : > { %1140 = vxpose.xlu0.b32.cont [14/16] (narrow) %v1108_v62, 8 }
 0x207   : > { %1141 = vxpose.xlu0.b32.cont [15/16] (narrow) %v1109_v61, 8 }
 0x20f   : > { %1142 = vxpose.xlu0.b32.end [16/16] (narrow) %v1110_v2, 8 }
 0x21a   : > { %1159 = vxpose.xlu1.b32.start [1/16] (narrow) %v1111_v29, 8 }
 0x222   : > { %1160 = vxpose.xlu1.b32.cont [2/16] (narrow) %v1112_v25, 8 }
 0x22a   : > { %1161 = vxpose.xlu1.b32.cont [3/16] (narrow) %v1113_v24, 8 }
 0x232   : > { %1162 = vxpose.xlu1.b32.cont [4/16] (narrow) %v1114_v42, 8 }
 0x23a   : > { %1163 = vxpose.xlu1.b32.cont [5/16] (narrow) %v1115_v43, 8 }
 0x23b   : > { %v1143_v5 = vpop.trf.xlu0 }
 0x23c   : > { %1198 = vst [vmem:[#allocation1] sm:$0xff] %v1143_v5 }
 0x242   : > { %1164 = vxpose.xlu1.b32.cont [6/16] (narrow) %v1116_v8, 8 }
 0x24a   : > { %1165 = vxpose.xlu1.b32.cont [7/16] (narrow) %v1117_v3, 8  ;;  %v927_v31 = vpop.xlane.xlu2 %926 }
 0x24b   : > { %v928_v52 = vcvt.f32.s32 %v927_v31 }
 0x24d   : > { %v931_v35 = vadd.s32 %v930_v37, %v928_v52 }
 0x24f   : > { %v1463_v39 = vadd.s32 4294967291, %v931_v35 }
 0x251   : > { %v995_v57 = vcvt.s32.f32 %v1463_v39 }
 0x252   : > { %1166 = vxpose.xlu1.b32.cont [8/16] (narrow) %v1118_v22, 8 }
 0x253   : > { %v912_v10 = vpop.xlane.xlu1 %911  ;;  %v1093_v34 = vsel %vm1061_vm4, %v1060_v9, %v995_v57 }
 0x254   : > { %v913_v6 = vcvt.f32.s32 %v912_v10  ;;  %v1126_v40 = vsel %vm1094_vm5, %v1093_v34, 0.0 }
 0x256   : > { %v916_v55 = vadd.s32 %v915_v30, %v913_v6 }
 0x258   : > { %v1462_v45 = vadd.s32 4294967291, %v916_v55 }
 0x25a   : > { %v994_v32 = vcvt.s32.f32 %v1462_v45  ;;  %1167 = vxpose.xlu1.b32.cont [9/16] (narrow) %v1119_v56, 8 }
 0x25c   : > { %v1092_v59 = vsel %vm1061_vm4, %v1059_v27, %v994_v32 }
 0x25d   : > { %v1125_v44 = vsel %vm1094_vm5, %v1092_v59, 0.0 }
 0x262   : > { %1168 = vxpose.xlu1.b32.cont [10/16] (narrow) %v1120_v7, 8 }
 0x26a   : > { %1169 = vxpose.xlu1.b32.cont [11/16] (narrow) %v1121_v54, 8 }
 0x272   : > { %1170 = vxpose.xlu1.b32.cont [12/16] (narrow) %v1122_v20, 8 }
 0x27a   : > { %1171 = vxpose.xlu1.b32.cont [13/16] (narrow) %v1123_v53, 8 }
 0x282   : > { %1172 = vxpose.xlu1.b32.cont [14/16] (narrow) %v1124_v33, 8 }
 0x28a   : > { %1173 = vxpose.xlu1.b32.cont [15/16] (narrow) %v1125_v44, 8 }
 0x292   : > { %1174 = vxpose.xlu1.b32.end [16/16] (narrow) %v1126_v40, 8 }
 0x2be   : > { %v1175_v18 = vpop.trf.xlu1 }
 0x2bf   : > { %v1193_v47 = vrot.slane %v1175_v18, 4  ;;  %1199 = vst [vmem:[#allocation1 + $0x9] sm:$0xff] %v1175_v18 }
 0x2c1   : > { %v1195_v1 = vsel %vm1194_vm8, %v1143_v5, %v1193_v47 }
 0x2c2   : > { %1197 = vst [vmem:[%s196_s9] sm:$0xff] %v1195_v1 }
 0x2c3   : > { %1616 = shalt.err (!%p1613_p7)
}
 0x2c4   : > { %1476 = dma.vmem_to_hbm [thread:$0]  (%p1818_p3), %s1241_s10, 128, %s1243_s16, %s1215_s4   ;;  %v3136_v58 = vlaneseq }
 0x2c5   : > { %s3135_s20 = sshll.u32 %s2898_s29, 1  ;;  %s1258_s21 = sshll.u32 %s1254_s27, 4  ;;  %s1259_s21 = int_to_ptr.hbm [resolvable:$true] %s1258_s21 }
 0x2c6   : > { %s203_s9 = scalar_lea.vmem [#allocation4], %s3135_s20  ;;  %v1201_v16 = vld [vmem:[#allocation1 + $0x4] ss:$9 sm:$0xff]  ;;  %vm2928_vm9 = vcmp.lt.s32.totalorder %v3136_v58, 256  ;;  %s1270_s15 = scalar_lea.hbm %s3000_s3, %s2895_s28 }
 0x2c7   : > { %s1256_s11 = sshll.u32 %s203_s9, 4  ;;  %1208 = vst [vmem:[#allocation1] sm:$0xff] %v1143_v5  ;;  %s1220_s10 = scalar_lea.sflag [#allocation5], %s2912_s6  ;;  %s1257_s11 = int_to_ptr.vmem [resolvable:$true] %s1256_s11 }
 0x2c8   : > { %1209 = vst [vmem:[#allocation1 + $0x9] sm:$0xff] %v1175_v18  ;;  %s1631_s16 = sshra.s32 %s1259_s21, 4  ;;  %s1637_s5 = scalar_lea.hbm %s2999_s2, 8  ;;  %s1632_s16 = int_to_ptr.hbm [resolvable:$true] %s1631_s16 }
 0x2c9   : > { %1207 = vst.msk [vmem:[%s203_s9] sm:$0x3] %vm2928_vm9, %v1201_v16  ;;  %s1633_s24 = scalar_lea.hbm %s1632_s16, 2  ;;  %p1638_p12 = scmp.lt.s32.totalorder %s1632_s16, %s2999_s2 }
 0x2ca   : > { %p1634_p9 = scmp.ne.s32.totalorder %s1632_s16, %s1633_s24  ;;  %p1639_p13 = scmp.lt.s32.totalorder %s1637_s5, %s1633_s24 }
 0x2cc   : > { %p1635_p10 = pnand %p1634_p9, %p1818_p3  ;;  %p1640_p0 = por %p1639_p13, %p1638_p12 }
 0x2ce   : > { %p1636_p11 = pneg %p1635_p10 }
 0x2d0   : > { %p1641_p1 = pnand %p1640_p0, %p1636_p11 }
 0x2d2   : > { %1644 = shalt.err (!%p1641_p1)
}
 0x2d3   : > { %1477 = dma.vmem_to_hbm [thread:$0]  (%p1818_p3), %s1257_s11, 32, %s1259_s21, %s1220_s10   ;;  %v1211_v38 = vld [vmem:[#allocation1 + $0x5] ss:$9 sm:$0xff] }
 0x2d4   : > { %s3139_s28 = smov %s3135_s20  ;;  %s1274_s0 = sshll.u32 %s1270_s15, 4  ;;  %s1275_s0 = int_to_ptr.hbm [resolvable:$true] %s1274_s0 }
 0x2d5   : > { %s210_s20 = scalar_lea.vmem [#allocation6], %s3139_s28  ;;  %s1659_s23 = sshra.s32 %s1275_s0, 4  ;;  %s1660_s23 = int_to_ptr.hbm [resolvable:$true] %s1659_s23 }
 0x2d6   : > { %s1272_s9 = sshll.u32 %s210_s20, 4  ;;  %1213 = vst.msk [vmem:[%s210_s20] sm:$0x3] %vm2928_vm9, %v1211_v38  ;;  %s1661_s16 = scalar_lea.hbm %s1660_s23, 2  ;;  %s1273_s9 = int_to_ptr.vmem [resolvable:$true] %s1272_s9 }
 0x2d7   : > { %p1662_p2 = scmp.ne.s32.totalorder %s1660_s23, %s1661_s16  ;;  %s1665_s29 = scalar_lea.hbm %s3000_s3, 8 }
 0x2d8   : > { %p1666_p6 = scmp.lt.s32.totalorder %s1660_s23, %s3000_s3  ;;  %p1667_p7 = scmp.lt.s32.totalorder %s1665_s29, %s1661_s16 }
 0x2d9   : > { %p1663_p4 = pnand %p1662_p2, %p1818_p3 }
 0x2da   : > { %p1668_p9 = por %p1667_p7, %p1666_p6 }
 0x2db   : > { %p1664_p5 = pneg %p1663_p4 }
 0x2dd   : > { %p1669_p10 = pnand %p1668_p9, %p1664_p5 }
 0x2df   : > { %1672 = shalt.err (!%p1669_p10)
}
 0x2e0   : > { %1478 = dma.vmem_to_hbm [thread:$0]  (%p1818_p3), %s1273_s9, 32, %s1275_s0, %s1220_s10  }
 0x2e1 PF: > { %p1492_p11 = scmp.ge.s32.totalorder %s1743_s19, 2  ;;  %s1286_s15 = sand.u32 1, %s1715_s12  }
 0x2e2   : > { %s1287_s4 = scalar_lea.sflag [#allocation3], %s1286_s15 }
 0x2e3   : > { %p1483_p12 = pnand %p1492_p11, %p1829_p8 }
 0x2e5   : > { %p1484_p13 = pneg %p1483_p12 }
 0x2e7   : > { %1706 = dma.done.wait (%p1484_p13), %s1287_s4, 128  }
 0x2e8   : > { %1708 = vsyncadd (%p1484_p13), %s1287_s4, 4294967168  ;;  %s3140_s5 = sadd.s32 4294967294, %s1743_s19  }
 0x2e9   : > { %s1296_s7 = sand.u32 1, %s3140_s5  }
 0x2ea   : > { %s1297_s8 = scalar_lea.sflag [#allocation5], %s1296_s7 }
 0x2eb   : > { %1710 = dma.done.wait (%p1484_p13), %s1297_s8, 64  }
 0x2ec   : > { %1712 = vsyncadd (%p1484_p13), %s1297_s8, 4294967232  ;;  %s20_s19 = sadd.s32 1, %s1743_s19   ;;  %s3141_s25 = sld [smem:[#allocation9_spill]] }
 0x2ed   : > { %p17_p3 = scmp.ge.s32.totalorder %s20_s19, 6   ;;  %s3142_s12 = smov %s1719_s13 }
 0x2ee   : > { %s3143_s13 = smov %s1723_s14  ;;  %s3144_s14 = smov %s1838_s30 }
 0x2ef   : > { %s3145_s15 = smov %s1735_s17  ;;  %s3146_s16 = smov %s1739_s18 }
 0x2f0   : > { %s3147_s17 = smov %s3150_s22  ;;  %19 = sbr.rel (!%p17_p3) target bundleno = 9 (0x9), region = 93 }
 0x2f2   : > { %s3148_s18 = smov %s3141_s25 }
 0x2f5   :  { %1313 = vsyncpa [#allocation3], 1 }
 0x2f6   :  { %1315 = vsyncpa [#allocation3 + $0x1], 1 }
 0x2f7   :  { %1316 = vsyncpa [#allocation5], 1 }
 0x2f8   :  { %1318 = vsyncpa [#allocation5 + $0x1], 1 }

</bundles_post_ra>
